<compile_context>
chip_gen: v5e
topology: v5e:2x2
jax: 0.10.0
libtpu: 0.0.40
codegen_flags: <defaults>
</compile_context>

<pallas_src>
import functools
import math

import jax
import jax.numpy as jnp
import numpy as np
from jax import lax
from jax.experimental import pallas as pl
from jax.experimental.pallas import tpu as pltpu

_MiB = 1 << 20


# ---------------------------------------------------------------------------
# Constant tensors (DFT matrices, gaussian mask) - built in numpy (float64
# angles) so the mask non-negativity can be asserted eagerly and the DFT
# twiddles are as accurate as possible before the f32/bf16 cast.
# ---------------------------------------------------------------------------
def gaussian_mask_np(h, w, mu=0.0, sigma=1.0):
    """numpy port of gaussian_map + the normalization done in FFTLoss.forward."""
    x = np.linspace(-1.0, 1.0, h)
    y = np.linspace(-1.0, 1.0, w)
    xx, yy = np.meshgrid(x, y, indexing="ij")          # torch default is 'ij'
    gauss = (1.0 / (2.0 * math.pi * sigma ** 2)) * np.exp(
        -((xx - mu) ** 2 + (yy - mu) ** 2) / (2.0 * sigma ** 2)
    )
    mask = 1.0 - gauss
    mask = mask - mask.min()
    mask = mask / mask.sum()
    return mask.astype(np.float32)                     # (h, w)


def make_consts_np(H, W, Wp):
    """[Cw | -Sw] (W, 2*Wp), [Ch ; Sh] (2H, H), zero-padded mask (H, Wp)."""
    Wr = W // 2 + 1
    n = np.arange(W, dtype=np.float64)[:, None]
    v = np.arange(Wr, dtype=np.float64)[None, :]
    ang_w = 2.0 * np.pi * n * v / W
    cw = np.zeros((W, Wp), np.float32)
    cw[:, :Wr] = np.cos(ang_w)
    nsw = np.zeros((W, Wp), np.float32)
    nsw[:, :Wr] = -np.sin(ang_w)
    cwsw = np.concatenate([cw, nsw], axis=1)           # (W, 2*Wp) = [Cw | -Sw]

    m = np.arange(H, dtype=np.float64)
    ang_h = 2.0 * np.pi * m[:, None] * m[None, :] / H
    chsh = np.concatenate(
        [np.cos(ang_h), np.sin(ang_h)], axis=0).astype(np.float32)  # (2H, H)

    mask = gaussian_mask_np(H, Wr)
    # The |pf*m - tf*m| == m*|rfft2(pred-target)| identity requires m >= 0.
    assert (mask >= 0.0).all(), "FFT gaussian mask must be non-negative."
    mask_p = np.zeros((H, Wp), np.float32)
    mask_p[:, :Wr] = mask
    return cwsw, chsh, mask_p


# ---------------------------------------------------------------------------
# Hardware-aware heuristics
# ---------------------------------------------------------------------------
def _vmem_capacity_bytes():
    try:
        info = pltpu.get_tpu_info()
        cap = getattr(info, "vmem_capacity_bytes", None)
        if cap:
            return int(cap)
    except Exception:
        pass
    return 128 * _MiB                                   # v5e/v6e default


def _num_tensorcores():
    """2 on dual-TensorCore parts (v7x / megacore), 1 on v5e/v6e."""
    try:
        info = pltpu.get_tpu_info()
        for attr in ("num_cores", "core_count", "num_tensorcores",
                     "tensorcore_count"):
            v = getattr(info, attr, None)
            if isinstance(v, int) and 1 <= v <= 8:
                return v
    except Exception:
        pass
    try:
        kind = jax.devices()[0].device_kind.lower()
        if any(s in kind for s in ("v4", "v5p", "v7", "tpu7")):
            return 2
    except Exception:
        pass
    return 1


def _pick_tiling(BC, H, W, Wp, in_bytes, cb, num_tc, budget):
    """Choose (T images/step, G parallel shards, S steps/shard)."""
    req = 8 // math.gcd(H, 8)                  # keep (T*H, W) block 8-sublane aligned

    def vmem_bytes(t):
        data = 2 * 2 * t * H * W * in_bytes                    # pred/target, dbl-buffered
        inter = (t * H * W * cb                                # diff
                 + t * H * 2 * Wp * (4 + cb)                   # y (f32) + compute-dtype copy
                 + t * 2 * H * H * cb                          # broadcast [Ch ; Sh]
                 + t * 2 * H * 2 * Wp * 4                      # fused 4-product z
                 + 3 * t * H * Wp * 4)                         # z_re / z_im / mag temps
        consts = (2 * (W * 2 * Wp + 2 * H * H) * cb            # twiddles (worst case 2 bufs)
                  + 2 * H * Wp * 4                             # mask
                  + H * Wp * 4)                                # accumulator scratch
        return data + inter + consts

    t_cap = max(1, min(BC, max(1, 2048 // max(H, 1)), 256))
    T = pl.cdiv(t_cap, req) * req
    while T > req and vmem_bytes(T) > budget:
        T = max(req, pl.cdiv(T // 2, req) * req)

    # Only force a multi-block split when a 2nd TensorCore can actually use it.
    if num_tc >= 2 and BC >= num_tc and pl.cdiv(BC, T) < num_tc:
        T = max(req, pl.cdiv(pl.cdiv(BC, num_tc), req) * req)

    nblk = pl.cdiv(BC, T)
    G = num_tc if (num_tc >= 2 and nblk >= num_tc) else 1
    S = pl.cdiv(nblk, G)
    return T, G, S


# ---------------------------------------------------------------------------
# Pallas kernel
# ---------------------------------------------------------------------------
def _fft_l1_kernel(pred_ref, target_ref, cwsw_ref, chsh_ref, mask_ref,
                   out_ref, acc_ref, *, T, H, Wp):
    s = pl.program_id(1)

    @pl.when(s == 0)
    def _():
        acc_ref[...] = jnp.zeros_like(acc_ref)

    cwsw = cwsw_ref[...]                                       # (W, 2*Wp) = [Cw | -Sw]
    x = (pred_ref[...] - target_ref[...]).astype(cwsw.dtype)   # (T*H, W)

    # Stage 1: rDFT along W for all T*H rows in ONE MXU matmul (N = 2*Wp >= 256).
    y = jnp.dot(x, cwsw, preferred_element_type=jnp.float32)   # (T*H, 2*Wp) = [y_re | y_im]

    # Stage 2: full DFT along H, batched over the T images, fused 4-product:
    #   [Ch ; Sh] @ [y_re | y_im] -> [[Ch@yr, Ch@yi], [Sh@yr, Sh@yi]]
    chsh = chsh_ref[...]                                       # (2*H, H)
    y3 = y.reshape(T, H, 2 * Wp).astype(chsh.dtype)            # leading-dim split
    lhs = jnp.broadcast_to(chsh[None, :, :], (T, 2 * H, H))
    z = lax.dot_general(
        lhs, y3,
        dimension_numbers=(((2,), (1,)), ((0,), (0,))),        # batched (B,M,K)@(B,K,N)
        preferred_element_type=jnp.float32)                    # (T, 2*H, 2*Wp)

    # Z = (Ch - i*Sh) @ (y_re + i*y_im)   (lane/sublane-aligned slices)
    z_re = z[:, :H, :Wp] + z[:, H:, Wp:]                       # Ch@y_re + Sh@y_im
    z_im = z[:, :H, Wp:] - z[:, H:, :Wp]                       # Ch@y_im - Sh@y_re
    mag = jnp.sqrt(z_re * z_re + z_im * z_im)                  # (T, H, Wp) complex abs
    acc_ref[...] += jnp.sum(mag, axis=0)                       # mask deferred to finalize

    @pl.when(s == pl.num_programs(1) - 1)
    def _():
        # Single masked cross-lane reduce + tiny store per shard.
        out_ref[...] = jnp.sum(acc_ref[...] * mask_ref[...]).reshape(1, 1, 1)


# ---------------------------------------------------------------------------
# Wrapper
# ---------------------------------------------------------------------------
def fft_loss(pred, target, reduction="sum", *, compute_dtype=jnp.float32):
    """Pallas implementation of FFTLoss.forward (NCHW inputs)."""
    if reduction not in ("sum", "mean"):
        # TODO(synk): reduction='none' (per-element complex-abs tensor output) not implemented.
        raise ValueError(f"Unsupported reduction mode: {reduction}")

    B, C, H, W = pred.shape
    Wr = W // 2 + 1
    Wp = pl.cdiv(Wr, 128) * 128
    BC = B * C

    cdt = jnp.dtype(compute_dtype)
    in_dtype = cdt if cdt == jnp.dtype(jnp.bfloat16) else jnp.dtype(jnp.float32)
    in_bytes = in_dtype.itemsize
    cb = cdt.itemsize

    cap = _vmem_capacity_bytes()
    vmem_limit = int(max(32 * _MiB, min(cap - 20 * _MiB, 100 * _MiB)))
    budget = int(max(8 * _MiB, vmem_limit // 2 - 4 * _MiB))
    num_tc = _num_tensorcores()

    T, G, S = _pick_tiling(BC, H, W, Wp, in_bytes, cb, num_tc, budget)
    BC_pad = G * S * T

    pred2 = pred.reshape(BC, H, W).astype(in_dtype)
    targ2 = target.reshape(BC, H, W).astype(in_dtype)
    if BC_pad != BC:
        padw = ((0, BC_pad - BC), (0, 0), (0, 0))
        pred2 = jnp.pad(pred2, padw)     # zero image -> zero spectrum -> 0 contribution
        targ2 = jnp.pad(targ2, padw)
    pred2 = pred2.reshape(BC_pad * H, W)
    targ2 = targ2.reshape(BC_pad * H, W)

    cwsw_np, chsh_np, mask_np = make_consts_np(H, W, Wp)
    cwsw = jnp.asarray(cwsw_np, dtype=cdt)
    chsh = jnp.asarray(chsh_np, dtype=cdt)
    mask = jnp.asarray(mask_np)                      # f32, multiplies the f32 accumulator

    kernel = functools.partial(_fft_l1_kernel, T=T, H=H, Wp=Wp)

    cost = pl.CostEstimate(
        flops=int(BC_pad * (4 * H * W * Wp + 8 * H * H * Wp + 8 * H * Wp)),
        transcendentals=int(BC_pad * H * Wp),
        bytes_accessed=int(2 * BC_pad * H * W * in_bytes
                           + (2 * W * Wp + 2 * H * H) * cb + H * Wp * 4 + G * 4),
    )

    def _call(single_buffer_consts):
        spec_kw = {"pipeline_mode": pl.Buffered(1)} if single_buffer_consts else {}

        def const_spec(shape):
            return pl.BlockSpec(shape, lambda g, s: (0,) * len(shape), **spec_kw)

        data_spec = pl.BlockSpec((T * H, W), lambda g, s: (g * S + s, 0))
        return pl.pallas_call(
            kernel,
            out_shape=jax.ShapeDtypeStruct((G, 1, 1), jnp.float32),
            grid_spec=pltpu.PrefetchScalarGridSpec(
                num_scalar_prefetch=0,
                grid=(G, S),
                in_specs=[
                    data_spec,                    # pred rows      (T*H, W)
                    data_spec,                    # target rows    (T*H, W)
                    const_spec((W, 2 * Wp)),      # [Cw | -Sw]
                    const_spec((2 * H, H)),       # [Ch ; Sh]
                    const_spec((H, Wp)),          # gaussian mask (freq-padded)
                ],
                out_specs=pl.BlockSpec((1, 1, 1), lambda g, s: (g, 0, 0)),
                scratch_shapes=[pltpu.VMEM((H, Wp), jnp.float32)],
            ),
            compiler_params=pltpu.CompilerParams(
                dimension_semantics=("parallel", "arbitrary"),
                vmem_limit_bytes=vmem_limit,
            ),
            cost_estimate=cost,
        )(pred2, targ2, cwsw, chsh, mask)

    try:
        out = _call(True)        # single-buffered constants (VMEM savings on v7x)
    except Exception:
        out = _call(False)       # fallback: default double-buffered constants

    total = jnp.sum(out)
    if reduction == "sum":
        return total
    return total / (BC * H * Wr)        # 'mean' over the complex rfft2 elements


# ---------------------------------------------------------------------------
# Pure-JAX reference (for sanity check)
# ---------------------------------------------------------------------------
def fft_loss_ref(pred, target):
    pf = jnp.fft.rfft2(pred.astype(jnp.float32))
    tf = jnp.fft.rfft2(target.astype(jnp.float32))
    h, w = pf.shape[-2], pf.shape[-1]
    mask = jnp.asarray(gaussian_mask_np(h, w))
    return jnp.sum(jnp.abs(pf * mask - tf * mask))


if __name__ == "__main__":
    key = jax.random.PRNGKey(0)
    k1, k2 = jax.random.split(key)
    B, C, H, W = 2, 4, 16, 16
    pred = jax.random.normal(k1, (B, C, H, W), dtype=jnp.float32)
    target = jax.random.normal(k2, (B, C, H, W), dtype=jnp.float32)

    ref = jax.block_until_ready(fft_loss_ref(pred, target))

    # f32 twiddles / inputs (default, tight tolerance).
    loss = jax.block_until_ready(fft_loss(pred, target, reduction="sum"))
    np.testing.assert_allclose(np.asarray(loss), np.asarray(ref), rtol=1e-3, atol=1e-3)

    # bf16 twiddles + bf16 input stream, f32 MXU accumulation (fast path).
    loss_bf16 = jax.block_until_ready(
        fft_loss(pred, target, reduction="sum", compute_dtype=jnp.bfloat16))
    np.testing.assert_allclose(np.asarray(loss_bf16), np.asarray(ref), rtol=5e-2, atol=5e-2)

    # 'mean' reduction (divides by the complex-tensor numel, matching torch).
    loss_mean = jax.block_until_ready(fft_loss(pred, target, reduction="mean"))
    np.testing.assert_allclose(np.asarray(loss_mean),
                               np.asarray(ref) / (B * C * H * (W // 2 + 1)),
                               rtol=1e-3, atol=1e-6)

    print("KERNEL_OK")
</pallas_src>

<mosaic_0001>
module attributes {stable_mosaic.version = 11 : i64} {
  func.func @_fft_l1_kernel(%arg0: i32, %arg1: i32, %arg2: memref<128x16xf32, #tpu.memory_space<vmem>>, %arg3: memref<128x16xf32, #tpu.memory_space<vmem>>, %arg4: memref<16x256xf32, #tpu.memory_space<vmem>>, %arg5: memref<32x16xf32, #tpu.memory_space<vmem>>, %arg6: memref<16x128xf32, #tpu.memory_space<vmem>>, %arg7: memref<1x1x1xf32, #tpu.memory_space<vmem>>, %arg8: memref<16x128xf32, #tpu.memory_space<vmem>>) attributes {dimension_semantics = [#tpu.dimension_semantics<parallel>, #tpu.dimension_semantics<arbitrary>], iteration_bounds = array<i64: 1, 1>, scalar_prefetch = 0 : i64, scratch_operands = 1 : i64, tpu.core_type = #tpu.core_type<tc>, window_params = [{transform_indices = @transform_0, window_bounds = array<i64: 128, 16>}, {transform_indices = @transform_1, window_bounds = array<i64: 128, 16>}, {pipeline_mode = #tpu.pipeline_mode<synchronous>, transform_indices = @transform_2, window_bounds = array<i64: 16, 256>}, {pipeline_mode = #tpu.pipeline_mode<synchronous>, transform_indices = @transform_3, window_bounds = array<i64: 32, 16>}, {pipeline_mode = #tpu.pipeline_mode<synchronous>, transform_indices = @transform_4, window_bounds = array<i64: 16, 128>}, {transform_indices = @transform_5, window_bounds = array<i64: 1, 1, 1>}]} {
    %c0_i32 = arith.constant 0 : i32
    %0 = arith.cmpi eq, %arg1, %c0_i32 : i32
    %1 = arith.extui %0 : i1 to i32
    %c0_i32_0 = arith.constant 0 : i32
    %2 = arith.cmpi ne, %1, %c0_i32_0 : i32
    scf.if %2 {
      %cst_16 = arith.constant 0.000000e+00 : f32
      %31 = vector.broadcast %cst_16 : f32 to vector<16x128xf32>
      %c0_17 = arith.constant 0 : index
      %c0_18 = arith.constant 0 : index
      %32 = vector.load %arg8[%c0_17, %c0_18] : memref<16x128xf32, #tpu.memory_space<vmem>>, vector<16x128xf32>
      tpu.vector_store %arg8[%c0_17, %c0_18], %31 {strides = array<i32>} : memref<16x128xf32, #tpu.memory_space<vmem>>, vector<16x128xf32>,
    } else {
    }
    %c0 = arith.constant 0 : index
    %c0_1 = arith.constant 0 : index
    %3 = vector.load %arg4[%c0, %c0_1] : memref<16x256xf32, #tpu.memory_space<vmem>>, vector<16x256xf32>
    %c0_2 = arith.constant 0 : index
    %c0_3 = arith.constant 0 : index
    %4 = vector.load %arg2[%c0_2, %c0_3] : memref<128x16xf32, #tpu.memory_space<vmem>>, vector<128x16xf32>
    %c0_4 = arith.constant 0 : index
    %c0_5 = arith.constant 0 : index
    %5 = vector.load %arg3[%c0_4, %c0_5] : memref<128x16xf32, #tpu.memory_space<vmem>>, vector<128x16xf32>
    %6 = arith.subf %4, %5 : vector<128x16xf32>
    %cst = arith.constant dense<0.000000e+00> : vector<128x256xf32>
    %7 = tpu.matmul %6, %3, %cst {dimension_numbers = #tpu.dot_dimension_numbers<[1], [0], [0], [1], [0, 0, 1, 1], [], []>} : vector<128x16xf32>, vector<16x256xf32>, vector<128x256xf32> -> vector<128x256xf32>
    %c0_6 = arith.constant 0 : index
    %c0_7 = arith.constant 0 : index
    %8 = vector.load %arg5[%c0_6, %c0_7] : memref<32x16xf32, #tpu.memory_space<vmem>>, vector<32x16xf32>
    %9 = vector.shape_cast %7 : vector<128x256xf32> to vector<8x16x256xf32>
    %10 = vector.shape_cast %8 : vector<32x16xf32> to vector<1x32x16xf32>
    %11 = vector.shape_cast %10 : vector<1x32x16xf32> to vector<1x32x16xf32>
    %12 = vector.broadcast %11 : vector<1x32x16xf32> to vector<8x32x16xf32>
    %cst_8 = arith.constant dense<0.000000e+00> : vector<8x32x256xf32>
    %13 = tpu.matmul %12, %9, %cst_8 {dimension_numbers = #tpu.dot_dimension_numbers<[2], [1], [1], [2], [0, 0, 0, 1, 1, 2], [0], [0]>} : vector<8x32x16xf32>, vector<8x16x256xf32>, vector<8x32x256xf32> -> vector<8x32x256xf32>
    %14 = vector.extract_strided_slice %13 {offsets = [0, 0, 0], sizes = [8, 16, 128], strides = [1, 1, 1]} : vector<8x32x256xf32> to vector<8x16x128xf32>
    %15 = vector.extract_strided_slice %13 {offsets = [0, 16, 128], sizes = [8, 16, 128], strides = [1, 1, 1]} : vector<8x32x256xf32> to vector<8x16x128xf32>
    %16 = arith.addf %14, %15 : vector<8x16x128xf32>
    %17 = vector.extract_strided_slice %13 {offsets = [0, 0, 128], sizes = [8, 16, 128], strides = [1, 1, 1]} : vector<8x32x256xf32> to vector<8x16x128xf32>
    %18 = vector.extract_strided_slice %13 {offsets = [0, 16, 0], sizes = [8, 16, 128], strides = [1, 1, 1]} : vector<8x32x256xf32> to vector<8x16x128xf32>
    %19 = arith.subf %17, %18 : vector<8x16x128xf32>
    %20 = arith.mulf %16, %16 : vector<8x16x128xf32>
    %21 = arith.mulf %19, %19 : vector<8x16x128xf32>
    %22 = arith.addf %20, %21 : vector<8x16x128xf32>
    %23 = math.sqrt %22 : vector<8x16x128xf32>
    %c0_9 = arith.constant 0 : index
    %c0_10 = arith.constant 0 : index
    %24 = vector.load %arg8[%c0_9, %c0_10] : memref<16x128xf32, #tpu.memory_space<vmem>>, vector<16x128xf32>
    %cst_11 = arith.constant dense<0.000000e+00> : vector<16x128xf32>
    %25 = vector.multi_reduction <add>, %23, %cst_11 [0] : vector<8x16x128xf32> to vector<16x128xf32>
    %26 = arith.addf %24, %25 : vector<16x128xf32>
    %c0_12 = arith.constant 0 : index
    %c0_13 = arith.constant 0 : index
    %27 = vector.load %arg8[%c0_12, %c0_13] : memref<16x128xf32, #tpu.memory_space<vmem>>, vector<16x128xf32>
    tpu.vector_store %arg8[%c0_12, %c0_13], %26 {strides = array<i32>} : memref<16x128xf32, #tpu.memory_space<vmem>>, vector<16x128xf32>,
    %c0_i32_14 = arith.constant 0 : i32
    %28 = arith.cmpi eq, %arg1, %c0_i32_14 : i32
    %29 = arith.extui %28 : i1 to i32
    %c0_i32_15 = arith.constant 0 : i32
    %30 = arith.cmpi ne, %29, %c0_i32_15 : i32
    scf.if %30 {
      %c0_16 = arith.constant 0 : index
      %c0_17 = arith.constant 0 : index
      %31 = vector.load %arg8[%c0_16, %c0_17] : memref<16x128xf32, #tpu.memory_space<vmem>>, vector<16x128xf32>
      %c0_18 = arith.constant 0 : index
      %c0_19 = arith.constant 0 : index
      %32 = vector.load %arg6[%c0_18, %c0_19] : memref<16x128xf32, #tpu.memory_space<vmem>>, vector<16x128xf32>
      %33 = arith.mulf %31, %32 : vector<16x128xf32>
      %34 = vector.shape_cast %33 : vector<16x128xf32> to vector<1x16x128xf32>
      %cst_20 = arith.constant dense<0.000000e+00> : vector<1xf32>
      %35 = vector.multi_reduction <add>, %34, %cst_20 [1, 2] : vector<1x16x128xf32> to vector<1xf32>
      %36 = vector.shape_cast %35 : vector<1xf32> to vector<1x1x1xf32>
      %37 = vector.extract %36[0, 0, 0] : f32 from vector<1x1x1xf32>
      %38 = vector.broadcast %37 : f32 to vector<1x1x1xf32>
      %c0_21 = arith.constant 0 : index
      %c0_22 = arith.constant 0 : index
      %c0_23 = arith.constant 0 : index
      %39 = vector.load %arg7[%c0_21, %c0_22, %c0_23] : memref<1x1x1xf32, #tpu.memory_space<vmem>>, vector<1x1x1xf32>
      tpu.vector_store %arg7[%c0_21, %c0_22, %c0_23], %38 {strides = array<i32>} : memref<1x1x1xf32, #tpu.memory_space<vmem>>, vector<1x1x1xf32>,
    } else {
    }
    return
  }
  func.func @transform_0(%arg0: i32, %arg1: i32) -> (i32, i32) {
    %c1_i32 = arith.constant 1 : i32
    %0 = arith.muli %arg0, %c1_i32 : i32
    %1 = arith.addi %0, %arg1 : i32
    %c0_i32 = arith.constant 0 : i32
    %c0_i32_0 = arith.constant 0 : i32
    return %1, %c0_i32 : i32, i32
  }
  func.func @transform_1(%arg0: i32, %arg1: i32) -> (i32, i32) {
    %c1_i32 = arith.constant 1 : i32
    %0 = arith.muli %arg0, %c1_i32 : i32
    %1 = arith.addi %0, %arg1 : i32
    %c0_i32 = arith.constant 0 : i32
    %c0_i32_0 = arith.constant 0 : i32
    return %1, %c0_i32 : i32, i32
  }
  func.func @transform_2(%arg0: i32, %arg1: i32) -> (i32, i32) {
    %c0_i32 = arith.constant 0 : i32
    %c0_i32_0 = arith.constant 0 : i32
    %c0_i32_1 = arith.constant 0 : i32
    return %c0_i32, %c0_i32_0 : i32, i32
  }
  func.func @transform_3(%arg0: i32, %arg1: i32) -> (i32, i32) {
    %c0_i32 = arith.constant 0 : i32
    %c0_i32_0 = arith.constant 0 : i32
    %c0_i32_1 = arith.constant 0 : i32
    return %c0_i32, %c0_i32_0 : i32, i32
  }
  func.func @transform_4(%arg0: i32, %arg1: i32) -> (i32, i32) {
    %c0_i32 = arith.constant 0 : i32
    %c0_i32_0 = arith.constant 0 : i32
    %c0_i32_1 = arith.constant 0 : i32
    return %c0_i32, %c0_i32_0 : i32, i32
  }
  func.func @transform_5(%arg0: i32, %arg1: i32) -> (i32, i32, i32) {
    %c0_i32 = arith.constant 0 : i32
    %c0_i32_0 = arith.constant 0 : i32
    %c0_i32_1 = arith.constant 0 : i32
    return %arg0, %c0_i32, %c0_i32_0 : i32, i32, i32
  }
}

module attributes {stable_mosaic.version = 11 : i64} {
  func.func @_fft_l1_kernel(%arg0: i32, %arg1: i32, %arg2: memref<128x16xf32, #tpu.memory_space<vmem>>, %arg3: memref<128x16xf32, #tpu.memory_space<vmem>>, %arg4: memref<16x256xf32, #tpu.memory_space<vmem>>, %arg5: memref<32x16xf32, #tpu.memory_space<vmem>>, %arg6: memref<16x128xf32, #tpu.memory_space<vmem>>, %arg7: memref<1x1x1xf32, #tpu.memory_space<vmem>>, %arg8: memref<16x128xf32, #tpu.memory_space<vmem>>) attributes {dimension_semantics = [#tpu.dimension_semantics<parallel>, #tpu.dimension_semantics<arbitrary>], iteration_bounds = array<i64: 1, 1>, scalar_prefetch = 0 : i64, scratch_operands = 1 : i64, tpu.core_type = #tpu.core_type<tc>, window_params = [{transform_indices = @transform_0, window_bounds = array<i64: 128, 16>}, {transform_indices = @transform_1, window_bounds = array<i64: 128, 16>}, {pipeline_mode = #tpu.pipeline_mode<synchronous>, transform_indices = @transform_2, window_bounds = array<i64: 16, 256>}, {pipeline_mode = #tpu.pipeline_mode<synchronous>, transform_indices = @transform_3, window_bounds = array<i64: 32, 16>}, {pipeline_mode = #tpu.pipeline_mode<synchronous>, transform_indices = @transform_4, window_bounds = array<i64: 16, 128>}, {transform_indices = @transform_5, window_bounds = array<i64: 1, 1, 1>}]} {
    %c0_i32 = arith.constant 0 : i32
    %0 = arith.cmpi eq, %arg1, %c0_i32 : i32
    %1 = arith.extui %0 : i1 to i32
    %c0_i32_0 = arith.constant 0 : i32
    %2 = arith.cmpi ne, %1, %c0_i32_0 : i32
    scf.if %2 {
      %cst_16 = arith.constant 0.000000e+00 : f32
      %31 = vector.broadcast %cst_16 : f32 to vector<16x128xf32>
      %c0_17 = arith.constant 0 : index
      %c0_18 = arith.constant 0 : index
      %32 = vector.load %arg8[%c0_17, %c0_18] : memref<16x128xf32, #tpu.memory_space<vmem>>, vector<16x128xf32>
      tpu.vector_store %arg8[%c0_17, %c0_18], %31 {strides = array<i32>} : memref<16x128xf32, #tpu.memory_space<vmem>>, vector<16x128xf32>,
    } else {
    }
    %c0 = arith.constant 0 : index
    %c0_1 = arith.constant 0 : index
    %3 = vector.load %arg4[%c0, %c0_1] : memref<16x256xf32, #tpu.memory_space<vmem>>, vector<16x256xf32>
    %c0_2 = arith.constant 0 : index
    %c0_3 = arith.constant 0 : index
    %4 = vector.load %arg2[%c0_2, %c0_3] : memref<128x16xf32, #tpu.memory_space<vmem>>, vector<128x16xf32>
    %c0_4 = arith.constant 0 : index
    %c0_5 = arith.constant 0 : index
    %5 = vector.load %arg3[%c0_4, %c0_5] : memref<128x16xf32, #tpu.memory_space<vmem>>, vector<128x16xf32>
    %6 = arith.subf %4, %5 : vector<128x16xf32>
    %cst = arith.constant dense<0.000000e+00> : vector<128x256xf32>
    %7 = tpu.matmul %6, %3, %cst {dimension_numbers = #tpu.dot_dimension_numbers<[1], [0], [0], [1], [0, 0, 1, 1], [], []>} : vector<128x16xf32>, vector<16x256xf32>, vector<128x256xf32> -> vector<128x256xf32>
    %c0_6 = arith.constant 0 : index
    %c0_7 = arith.constant 0 : index
    %8 = vector.load %arg5[%c0_6, %c0_7] : memref<32x16xf32, #tpu.memory_space<vmem>>, vector<32x16xf32>
    %9 = vector.shape_cast %7 : vector<128x256xf32> to vector<8x16x256xf32>
    %10 = vector.shape_cast %8 : vector<32x16xf32> to vector<1x32x16xf32>
    %11 = vector.shape_cast %10 : vector<1x32x16xf32> to vector<1x32x16xf32>
    %12 = vector.broadcast %11 : vector<1x32x16xf32> to vector<8x32x16xf32>
    %cst_8 = arith.constant dense<0.000000e+00> : vector<8x32x256xf32>
    %13 = tpu.matmul %12, %9, %cst_8 {dimension_numbers = #tpu.dot_dimension_numbers<[2], [1], [1], [2], [0, 0, 0, 1, 1, 2], [0], [0]>} : vector<8x32x16xf32>, vector<8x16x256xf32>, vector<8x32x256xf32> -> vector<8x32x256xf32>
    %14 = vector.extract_strided_slice %13 {offsets = [0, 0, 0], sizes = [8, 16, 128], strides = [1, 1, 1]} : vector<8x32x256xf32> to vector<8x16x128xf32>
    %15 = vector.extract_strided_slice %13 {offsets = [0, 16, 128], sizes = [8, 16, 128], strides = [1, 1, 1]} : vector<8x32x256xf32> to vector<8x16x128xf32>
    %16 = arith.addf %14, %15 : vector<8x16x128xf32>
    %17 = vector.extract_strided_slice %13 {offsets = [0, 0, 128], sizes = [8, 16, 128], strides = [1, 1, 1]} : vector<8x32x256xf32> to vector<8x16x128xf32>
    %18 = vector.extract_strided_slice %13 {offsets = [0, 16, 0], sizes = [8, 16, 128], strides = [1, 1, 1]} : vector<8x32x256xf32> to vector<8x16x128xf32>
    %19 = arith.subf %17, %18 : vector<8x16x128xf32>
    %20 = arith.mulf %16, %16 : vector<8x16x128xf32>
    %21 = arith.mulf %19, %19 : vector<8x16x128xf32>
    %22 = arith.addf %20, %21 : vector<8x16x128xf32>
    %23 = math.sqrt %22 : vector<8x16x128xf32>
    %c0_9 = arith.constant 0 : index
    %c0_10 = arith.constant 0 : index
    %24 = vector.load %arg8[%c0_9, %c0_10] : memref<16x128xf32, #tpu.memory_space<vmem>>, vector<16x128xf32>
    %cst_11 = arith.constant dense<0.000000e+00> : vector<16x128xf32>
    %25 = vector.multi_reduction <add>, %23, %cst_11 [0] : vector<8x16x128xf32> to vector<16x128xf32>
    %26 = arith.addf %24, %25 : vector<16x128xf32>
    %c0_12 = arith.constant 0 : index
    %c0_13 = arith.constant 0 : index
    %27 = vector.load %arg8[%c0_12, %c0_13] : memref<16x128xf32, #tpu.memory_space<vmem>>, vector<16x128xf32>
    tpu.vector_store %arg8[%c0_12, %c0_13], %26 {strides = array<i32>} : memref<16x128xf32, #tpu.memory_space<vmem>>, vector<16x128xf32>,
    %c0_i32_14 = arith.constant 0 : i32
    %28 = arith.cmpi eq, %arg1, %c0_i32_14 : i32
    %29 = arith.extui %28 : i1 to i32
    %c0_i32_15 = arith.constant 0 : i32
    %30 = arith.cmpi ne, %29, %c0_i32_15 : i32
    scf.if %30 {
      %c0_16 = arith.constant 0 : index
      %c0_17 = arith.constant 0 : index
      %31 = vector.load %arg8[%c0_16, %c0_17] : memref<16x128xf32, #tpu.memory_space<vmem>>, vector<16x128xf32>
      %c0_18 = arith.constant 0 : index
      %c0_19 = arith.constant 0 : index
      %32 = vector.load %arg6[%c0_18, %c0_19] : memref<16x128xf32, #tpu.memory_space<vmem>>, vector<16x128xf32>
      %33 = arith.mulf %31, %32 : vector<16x128xf32>
      %34 = vector.shape_cast %33 : vector<16x128xf32> to vector<1x16x128xf32>
      %cst_20 = arith.constant dense<0.000000e+00> : vector<1xf32>
      %35 = vector.multi_reduction <add>, %34, %cst_20 [1, 2] : vector<1x16x128xf32> to vector<1xf32>
      %36 = vector.shape_cast %35 : vector<1xf32> to vector<1x1x1xf32>
      %37 = vector.extract %36[0, 0, 0] : f32 from vector<1x1x1xf32>
      %38 = vector.broadcast %37 : f32 to vector<1x1x1xf32>
      %c0_21 = arith.constant 0 : index
      %c0_22 = arith.constant 0 : index
      %c0_23 = arith.constant 0 : index
      %39 = vector.load %arg7[%c0_21, %c0_22, %c0_23] : memref<1x1x1xf32, #tpu.memory_space<vmem>>, vector<1x1x1xf32>
      tpu.vector_store %arg7[%c0_21, %c0_22, %c0_23], %38 {strides = array<i32>} : memref<1x1x1xf32, #tpu.memory_space<vmem>>, vector<1x1x1xf32>,
    } else {
    }
    return
  }
  func.func @transform_0(%arg0: i32, %arg1: i32) -> (i32, i32) {
    %c1_i32 = arith.constant 1 : i32
    %0 = arith.muli %arg0, %c1_i32 : i32
    %1 = arith.addi %0, %arg1 : i32
    %c0_i32 = arith.constant 0 : i32
    %c0_i32_0 = arith.constant 0 : i32
    return %1, %c0_i32 : i32, i32
  }
  func.func @transform_1(%arg0: i32, %arg1: i32) -> (i32, i32) {
    %c1_i32 = arith.constant 1 : i32
    %0 = arith.muli %arg0, %c1_i32 : i32
    %1 = arith.addi %0, %arg1 : i32
    %c0_i32 = arith.constant 0 : i32
    %c0_i32_0 = arith.constant 0 : i32
    return %1, %c0_i32 : i32, i32
  }
  func.func @transform_2(%arg0: i32, %arg1: i32) -> (i32, i32) {
    %c0_i32 = arith.constant 0 : i32
    %c0_i32_0 = arith.constant 0 : i32
    %c0_i32_1 = arith.constant 0 : i32
    return %c0_i32, %c0_i32_0 : i32, i32
  }
  func.func @transform_3(%arg0: i32, %arg1: i32) -> (i32, i32) {
    %c0_i32 = arith.constant 0 : i32
    %c0_i32_0 = arith.constant 0 : i32
    %c0_i32_1 = arith.constant 0 : i32
    return %c0_i32, %c0_i32_0 : i32, i32
  }
  func.func @transform_4(%arg0: i32, %arg1: i32) -> (i32, i32) {
    %c0_i32 = arith.constant 0 : i32
    %c0_i32_0 = arith.constant 0 : i32
    %c0_i32_1 = arith.constant 0 : i32
    return %c0_i32, %c0_i32_0 : i32, i32
  }
  func.func @transform_5(%arg0: i32, %arg1: i32) -> (i32, i32, i32) {
    %c0_i32 = arith.constant 0 : i32
    %c0_i32_0 = arith.constant 0 : i32
    %c0_i32_1 = arith.constant 0 : i32
    return %arg0, %c0_i32, %c0_i32_0 : i32, i32, i32
  }
}

</mosaic_0001>

<bundles_post_ra>
// kernel: tpu_custom_call.1
= control target key start
LH: loop header
LB: loop body
LE: loop exit
PB: predicated region body
PF: predicated region fallthrough
CT: control target
= control target key end

     0   :  { %vm123_vm0 = vcmask 130048   ;;  %s1723_s0 = inlined_call_operand.vmem [shape: f32[128,16], index: 0, kind: input, shape index: {}]   ;;  %s1724_s1 = inlined_call_operand.vmem [shape: f32[128,16], index: 1, kind: input, shape index: {}]   ;;  %s1725_s2 = inlined_call_operand.vmem [shape: f32[16,256], index: 2, kind: input, shape index: {}]   ;;  %s1726_s3 = inlined_call_operand.vmem [shape: f32[32,16], index: 3, kind: input, shape index: {}]   ;;  %s1727_s4 = inlined_call_operand.vmem [shape: f32[16,128], index: 4, kind: input, shape index: {}]   ;;  %s1728_s5 = inlined_call_operand.hbm [shape: f32[1,1,1], index: 5, kind: output, shape index: {}]  }
   0x1   :  { %v73_v0 = vld [vmem:[%s1725_s2 + $0x10] sm:$0xff]  ;;  %v74_v1 = vld [vmem:[%s1725_s2 + $0x18] sm:$0xff]  ;;  %v71_v2 = vld [vmem:[%s1725_s2] sm:$0xff] }
   0x2   :  { %186 = vmatpush.msra.mxu0 %v73_v0  ;;  %251 = vmatpush.msra.mxu1 %v74_v1  ;;  %v72_v3 = vld [vmem:[%s1725_s2 + $0x8] sm:$0xff]  ;;  %v75_v4 = vld [vmem:[%s1723_s0] sm:$0xff] }
   0x3   :  { %v91_v5 = vld [vmem:[%s1724_s1] sm:$0xff]  ;;  %v76_v7 = vld [vmem:[%s1723_s0 + $0x8] sm:$0xff] }
   0x4   :  { %v107_v6 = vsub.f32 %v75_v4, %v91_v5  ;;  %187 = vmatpush.msra.mxu0 %v71_v2  ;;  %252 = vmatpush.msra.mxu1 %v72_v3  ;;  %v92_v8 = vld [vmem:[%s1724_s1 + $0x8] sm:$0xff] }
   0x6   :  { %1124 = vmatmul.msk.f32.vlgmr.msra.gmra.mxu0 %vm123_vm0, %v107_v6  ;;  %1140 = vmatmul.msk.f32.vlgmr.msra.gmra.mxu1 %vm123_vm0, %v107_v6 }
   0x7   :  { %10 = vsyncpa [#allocation4], 0  ;;  %v108_v9 = vsub.f32 %v76_v7, %v92_v8  ;;  %v77_v10 = vld [vmem:[%s1723_s0 + $0x10] sm:$0xff]  ;;  %v78_v13 = vld [vmem:[%s1723_s0 + $0x18] sm:$0xff]  ;;  %s1281_s21 = smov [#allocation3]   ;;  %s1103_s25 = sshll.u32 %s1728_s5, 4  ;;  %s1104_s25 = int_to_ptr.hbm [resolvable:$true] %s1103_s25 }
   0x8   :  { %v93_v11 = vld [vmem:[%s1724_s1 + $0x10] sm:$0xff]  ;;  %v94_v14 = vld [vmem:[%s1724_s1 + $0x18] sm:$0xff]  ;;  %v79_v16 = vld [vmem:[%s1723_s0 + $0x20] sm:$0xff]  ;;  %s1101_s22 = sshll.u32 %s1281_s21, 4  ;;  %s1102_s22 = int_to_ptr.vmem [resolvable:$true] %s1101_s22 }
   0x9   :  { %v109_v12 = vsub.f32 %v77_v10, %v93_v11  ;;  %v110_v15 = vsub.f32 %v78_v13, %v94_v14  ;;  %v95_v17 = vld [vmem:[%s1724_s1 + $0x20] sm:$0xff]  ;;  %v80_v19 = vld [vmem:[%s1723_s0 + $0x28] sm:$0xff]  ;;  %v81_v22 = vld [vmem:[%s1723_s0 + $0x30] sm:$0xff] }
   0xa   :  { %v111_v18 = vsub.f32 %v79_v16, %v95_v17  ;;  %v96_v20 = vld [vmem:[%s1724_s1 + $0x28] sm:$0xff]  ;;  %v97_v23 = vld [vmem:[%s1724_s1 + $0x30] sm:$0xff]  ;;  %v82_v25 = vld [vmem:[%s1723_s0 + $0x38] sm:$0xff] }
   0xb   :  { %v112_v21 = vsub.f32 %v80_v19, %v96_v20  ;;  %v113_v24 = vsub.f32 %v81_v22, %v97_v23  ;;  %v98_v26 = vld [vmem:[%s1724_s1 + $0x38] sm:$0xff]  ;;  %v83_v28 = vld [vmem:[%s1723_s0 + $0x40] sm:$0xff]  ;;  %v84_v31 = vld [vmem:[%s1723_s0 + $0x48] sm:$0xff] }
   0xc   :  { %v114_v27 = vsub.f32 %v82_v25, %v98_v26  ;;  %v99_v29 = vld [vmem:[%s1724_s1 + $0x40] sm:$0xff]  ;;  %v100_v32 = vld [vmem:[%s1724_s1 + $0x48] sm:$0xff]  ;;  %v85_v34 = vld [vmem:[%s1723_s0 + $0x50] sm:$0xff] }
   0xd   :  { %v115_v30 = vsub.f32 %v83_v28, %v99_v29  ;;  %v116_v33 = vsub.f32 %v84_v31, %v100_v32  ;;  %v101_v35 = vld [vmem:[%s1724_s1 + $0x50] sm:$0xff]  ;;  %v86_v37 = vld [vmem:[%s1723_s0 + $0x58] sm:$0xff]  ;;  %v87_v40 = vld [vmem:[%s1723_s0 + $0x60] sm:$0xff] }
   0xe   :  { %1125 = vmatmul.msk.f32.gmra.mxu0 %vm123_vm0, %v108_v9  ;;  %1141 = vmatmul.msk.f32.gmra.mxu1 %vm123_vm0, %v108_v9  ;;  %v117_v36 = vsub.f32 %v85_v34, %v101_v35  ;;  %v102_v38 = vld [vmem:[%s1724_s1 + $0x58] sm:$0xff]  ;;  %v103_v41 = vld [vmem:[%s1724_s1 + $0x60] sm:$0xff]  ;;  %v88_v43 = vld [vmem:[%s1723_s0 + $0x68] sm:$0xff] }
   0xf   :  { %v118_v39 = vsub.f32 %v86_v37, %v102_v38  ;;  %v119_v42 = vsub.f32 %v87_v40, %v103_v41  ;;  %v104_v44 = vld [vmem:[%s1724_s1 + $0x68] sm:$0xff]  ;;  %v89_v46 = vld [vmem:[%s1723_s0 + $0x70] sm:$0xff]  ;;  %v90_v49 = vld [vmem:[%s1723_s0 + $0x78] sm:$0xff] }
  0x10   :  { %v120_v45 = vsub.f32 %v88_v43, %v104_v44  ;;  %v105_v47 = vld [vmem:[%s1724_s1 + $0x70] sm:$0xff]  ;;  %v106_v50 = vld [vmem:[%s1724_s1 + $0x78] sm:$0xff]  ;;  %v1455_v56 = vld [vmem:[%s1726_s3] sm:$0xff] }
  0x11   :  { %v121_v48 = vsub.f32 %v89_v46, %v105_v47  ;;  %v122_v51 = vsub.f32 %v90_v49, %v106_v50  ;;  %v1464_v59 = vld [vmem:[%s1726_s3 + $0x8] sm:$0xff]  ;;  %v1473_v62 = vld [vmem:[%s1726_s3 + $0x10] sm:$0xff]  ;;  %v1482_v1 = vld [vmem:[%s1726_s3 + $0x18] sm:$0xff] }
  0x16   :  { %1126 = vmatmul.msk.f32.gmra.mxu0 %vm123_vm0, %v109_v12  ;;  %1142 = vmatmul.msk.f32.gmra.mxu1 %vm123_vm0, %v109_v12 }
  0x1e   :  { %1127 = vmatmul.msk.f32.gmra.mxu0 %vm123_vm0, %v110_v15  ;;  %1143 = vmatmul.msk.f32.gmra.mxu1 %vm123_vm0, %v110_v15 }
  0x26   :  { %1128 = vmatmul.msk.f32.gmra.mxu0 %vm123_vm0, %v111_v18  ;;  %1144 = vmatmul.msk.f32.gmra.mxu1 %vm123_vm0, %v111_v18 }
  0x2e   :  { %1129 = vmatmul.msk.f32.gmra.mxu0 %vm123_vm0, %v112_v21  ;;  %1145 = vmatmul.msk.f32.gmra.mxu1 %vm123_vm0, %v112_v21 }
  0x36   :  { %1130 = vmatmul.msk.f32.gmra.mxu0 %vm123_vm0, %v113_v24  ;;  %1146 = vmatmul.msk.f32.gmra.mxu1 %vm123_vm0, %v113_v24 }
  0x3e   :  { %1131 = vmatmul.msk.f32.gmra.mxu0 %vm123_vm0, %v114_v27  ;;  %1147 = vmatmul.msk.f32.gmra.mxu1 %vm123_vm0, %v114_v27 }
  0x46   :  { %1132 = vmatmul.msk.f32.gmra.mxu0 %vm123_vm0, %v115_v30  ;;  %1148 = vmatmul.msk.f32.gmra.mxu1 %vm123_vm0, %v115_v30 }
  0x4e   :  { %1133 = vmatmul.msk.f32.gmra.mxu0 %vm123_vm0, %v116_v33  ;;  %1149 = vmatmul.msk.f32.gmra.mxu1 %vm123_vm0, %v116_v33 }
  0x56   :  { %1134 = vmatmul.msk.f32.gmra.mxu0 %vm123_vm0, %v117_v36  ;;  %1150 = vmatmul.msk.f32.gmra.mxu1 %vm123_vm0, %v117_v36 }
  0x5e   :  { %1135 = vmatmul.msk.f32.gmra.mxu0 %vm123_vm0, %v118_v39  ;;  %1151 = vmatmul.msk.f32.gmra.mxu1 %vm123_vm0, %v118_v39 }
  0x66   :  { %1136 = vmatmul.msk.f32.gmra.mxu0 %vm123_vm0, %v119_v42  ;;  %1152 = vmatmul.msk.f32.gmra.mxu1 %vm123_vm0, %v119_v42 }
  0x6e   :  { %1137 = vmatmul.msk.f32.gmra.mxu0 %vm123_vm0, %v120_v45  ;;  %1153 = vmatmul.msk.f32.gmra.mxu1 %vm123_vm0, %v120_v45 }
  0x76   :  { %1138 = vmatmul.msk.f32.gmra.mxu0 %vm123_vm0, %v121_v48  ;;  %1154 = vmatmul.msk.f32.gmra.mxu1 %vm123_vm0, %v121_v48 }
  0x7e   :  { %1139 = vmatmul.msk.f32.gmra.mxu0 %vm123_vm0, %v122_v51  ;;  %1155 = vmatmul.msk.f32.gmra.mxu1 %vm123_vm0, %v122_v51 }
  0x83   :  { %v189_v52 = vpop.f32.mrf.mxu0  ;;  %v254_v53 = vpop.f32.mrf.mxu1 }
  0x8b   :  { %v192_v54 = vpop.f32.mrf.mxu0  ;;  %v257_v55 = vpop.f32.mrf.mxu1 }
  0x8c   :  { %332 = vmatpush.msra.mxu2 %v192_v54  ;;  %361 = vmatpush.msra.mxu3 %v257_v55 }
  0x8e   :  { %333 = vmatpush.msra.mxu2 %v189_v52  ;;  %362 = vmatpush.msra.mxu3 %v254_v53 }
  0x8f   :  { %1156 = vmatmul.msk.f32.vlgmr.msra.gmra.mxu2 %vm123_vm0, %v1455_v56  ;;  %1160 = vmatmul.msk.f32.vlgmr.msra.gmra.mxu3 %vm123_vm0, %v1455_v56 }
  0x93   :  { %v195_v57 = vpop.f32.mrf.mxu0  ;;  %v260_v58 = vpop.f32.mrf.mxu1 }
  0x97   :  { %1157 = vmatmul.msk.f32.gmra.mxu2 %vm123_vm0, %v1464_v59  ;;  %1161 = vmatmul.msk.f32.gmra.mxu3 %vm123_vm0, %v1464_v59 }
  0x9b   :  { %v198_v60 = vpop.f32.mrf.mxu0  ;;  %v263_v61 = vpop.f32.mrf.mxu1 }
  0x9c   :  { %390 = vmatpush.msrb.mxu2 %v198_v60  ;;  %419 = vmatpush.msrb.mxu3 %v263_v61 }
  0x9e   :  { %391 = vmatpush.msrb.mxu2 %v195_v57  ;;  %420 = vmatpush.msrb.mxu3 %v260_v58 }
  0x9f   :  { %1158 = vmatmul.msk.f32.gmra.mxu2 %vm123_vm0, %v1473_v62  ;;  %1162 = vmatmul.msk.f32.gmra.mxu3 %vm123_vm0, %v1473_v62 }
  0xa3   :  { %v201_v63 = vpop.f32.mrf.mxu0  ;;  %v266_v0 = vpop.f32.mrf.mxu1 }
  0xa7   :  { %1159 = vmatmul.msk.f32.gmra.mxu2 %vm123_vm0, %v1482_v1  ;;  %1163 = vmatmul.msk.f32.gmra.mxu3 %vm123_vm0, %v1482_v1 }
  0xab   :  { %v204_v2 = vpop.f32.mrf.mxu0  ;;  %v269_v3 = vpop.f32.mrf.mxu1 }
  0xac   :  { %448 = vmatpush.msra.mxu2 %v204_v2  ;;  %477 = vmatpush.msra.mxu3 %v269_v3 }
  0xae   :  { %449 = vmatpush.msra.mxu2 %v201_v63  ;;  %478 = vmatpush.msra.mxu3 %v266_v0 }
  0xaf   :  { %1164 = vmatmul.msk.f32.vlgmr.msrb.gmra.mxu2 %vm123_vm0, %v1455_v56  ;;  %1168 = vmatmul.msk.f32.vlgmr.msrb.gmra.mxu3 %vm123_vm0, %v1455_v56 }
  0xb3   :  { %v207_v4 = vpop.f32.mrf.mxu0  ;;  %v272_v5 = vpop.f32.mrf.mxu1 }
  0xb7   :  { %1165 = vmatmul.msk.f32.gmra.mxu2 %vm123_vm0, %v1464_v59  ;;  %1169 = vmatmul.msk.f32.gmra.mxu3 %vm123_vm0, %v1464_v59 }
  0xbb   :  { %v210_v6 = vpop.f32.mrf.mxu0  ;;  %v275_v7 = vpop.f32.mrf.mxu1 }
  0xbc   :  { %506 = vmatpush.msrb.mxu2 %v210_v6  ;;  %535 = vmatpush.msrb.mxu3 %v275_v7 }
  0xbe   :  { %507 = vmatpush.msrb.mxu2 %v207_v4  ;;  %536 = vmatpush.msrb.mxu3 %v272_v5 }
  0xbf   :  { %1166 = vmatmul.msk.f32.gmra.mxu2 %vm123_vm0, %v1473_v62  ;;  %1170 = vmatmul.msk.f32.gmra.mxu3 %vm123_vm0, %v1473_v62 }
  0xc3   :  { %v213_v8 = vpop.f32.mrf.mxu0  ;;  %v278_v9 = vpop.f32.mrf.mxu1 }
  0xc7   :  { %1167 = vmatmul.msk.f32.gmra.mxu2 %vm123_vm0, %v1482_v1  ;;  %1171 = vmatmul.msk.f32.gmra.mxu3 %vm123_vm0, %v1482_v1 }
  0xcb   :  { %v216_v10 = vpop.f32.mrf.mxu0  ;;  %v281_v11 = vpop.f32.mrf.mxu1 }
  0xcc   :  { %564 = vmatpush.msrb.mxu0 %v216_v10  ;;  %593 = vmatpush.msrb.mxu1 %v281_v11 }
  0xce   :  { %565 = vmatpush.msrb.mxu0 %v213_v8  ;;  %594 = vmatpush.msrb.mxu1 %v278_v9 }
  0xcf   :  { %1172 = vmatmul.msk.f32.vlgmr.msra.gmra.mxu2 %vm123_vm0, %v1455_v56  ;;  %1176 = vmatmul.msk.f32.vlgmr.msra.gmra.mxu3 %vm123_vm0, %v1455_v56 }
  0xd0   :  { %1188 = vmatmul.msk.f32.vlgmr.msrb.gmra.mxu0 %vm123_vm0, %v1455_v56  ;;  %1192 = vmatmul.msk.f32.vlgmr.msrb.gmra.mxu1 %vm123_vm0, %v1455_v56 }
  0xd3   :  { %v219_v12 = vpop.f32.mrf.mxu0  ;;  %v284_v13 = vpop.f32.mrf.mxu1 }
  0xd7   :  { %1173 = vmatmul.msk.f32.gmra.mxu2 %vm123_vm0, %v1464_v59  ;;  %1177 = vmatmul.msk.f32.gmra.mxu3 %vm123_vm0, %v1464_v59 }
  0xd8   :  { %1189 = vmatmul.msk.f32.gmra.mxu0 %vm123_vm0, %v1464_v59  ;;  %1193 = vmatmul.msk.f32.gmra.mxu1 %vm123_vm0, %v1464_v59 }
  0xdb   :  { %v222_v14 = vpop.f32.mrf.mxu0  ;;  %v287_v15 = vpop.f32.mrf.mxu1 }
  0xdc   :  { %622 = vmatpush.msra.mxu2 %v222_v14  ;;  %651 = vmatpush.msra.mxu3 %v287_v15 }
  0xde   :  { %623 = vmatpush.msra.mxu2 %v219_v12  ;;  %652 = vmatpush.msra.mxu3 %v284_v13 }
  0xdf   :  { %1174 = vmatmul.msk.f32.gmra.mxu2 %vm123_vm0, %v1473_v62  ;;  %1178 = vmatmul.msk.f32.gmra.mxu3 %vm123_vm0, %v1473_v62 }
  0xe0   :  { %1190 = vmatmul.msk.f32.gmra.mxu0 %vm123_vm0, %v1473_v62  ;;  %1194 = vmatmul.msk.f32.gmra.mxu1 %vm123_vm0, %v1473_v62 }
  0xe3   :  { %v225_v16 = vpop.f32.mrf.mxu0  ;;  %v290_v17 = vpop.f32.mrf.mxu1 }
  0xe7   :  { %1175 = vmatmul.msk.f32.gmra.mxu2 %vm123_vm0, %v1482_v1  ;;  %1179 = vmatmul.msk.f32.gmra.mxu3 %vm123_vm0, %v1482_v1 }
  0xe8   :  { %1191 = vmatmul.msk.f32.gmra.mxu0 %vm123_vm0, %v1482_v1  ;;  %1195 = vmatmul.msk.f32.gmra.mxu1 %vm123_vm0, %v1482_v1 }
  0xeb   :  { %v228_v18 = vpop.f32.mrf.mxu0  ;;  %v293_v19 = vpop.f32.mrf.mxu1 }
  0xec   :  { %680 = vmatpush.msra.mxu0 %v228_v18  ;;  %709 = vmatpush.msra.mxu1 %v293_v19 }
  0xee   :  { %681 = vmatpush.msra.mxu0 %v225_v16  ;;  %710 = vmatpush.msra.mxu1 %v290_v17 }
  0xef   :  { %1180 = vmatmul.msk.f32.vlgmr.msrb.gmra.mxu2 %vm123_vm0, %v1455_v56  ;;  %1184 = vmatmul.msk.f32.vlgmr.msrb.gmra.mxu3 %vm123_vm0, %v1455_v56 }
  0xf0   :  { %1204 = vmatmul.msk.f32.vlgmr.msra.gmra.mxu0 %vm123_vm0, %v1455_v56  ;;  %1208 = vmatmul.msk.f32.vlgmr.msra.gmra.mxu1 %vm123_vm0, %v1455_v56 }
  0xf3   :  { %v231_v20 = vpop.f32.mrf.mxu0  ;;  %v296_v21 = vpop.f32.mrf.mxu1 }
  0xf7   :  { %1181 = vmatmul.msk.f32.gmra.mxu2 %vm123_vm0, %v1464_v59  ;;  %1185 = vmatmul.msk.f32.gmra.mxu3 %vm123_vm0, %v1464_v59 }
  0xf8   :  { %1205 = vmatmul.msk.f32.gmra.mxu0 %vm123_vm0, %v1464_v59  ;;  %1209 = vmatmul.msk.f32.gmra.mxu1 %vm123_vm0, %v1464_v59 }
  0xfb   :  { %v234_v22 = vpop.f32.mrf.mxu0  ;;  %v299_v23 = vpop.f32.mrf.mxu1 }
  0xfc   :  { %738 = vmatpush.msrb.mxu2 %v234_v22  ;;  %767 = vmatpush.msrb.mxu3 %v299_v23 }
  0xfe   :  { %739 = vmatpush.msrb.mxu2 %v231_v20  ;;  %768 = vmatpush.msrb.mxu3 %v296_v21 }
  0xff   :  { %1182 = vmatmul.msk.f32.gmra.mxu2 %vm123_vm0, %v1473_v62  ;;  %1186 = vmatmul.msk.f32.gmra.mxu3 %vm123_vm0, %v1473_v62 }
 0x100   :  { %1206 = vmatmul.msk.f32.gmra.mxu0 %vm123_vm0, %v1473_v62  ;;  %1210 = vmatmul.msk.f32.gmra.mxu1 %vm123_vm0, %v1473_v62 }
 0x107   :  { %1183 = vmatmul.msk.f32.gmra.mxu2 %vm123_vm0, %v1482_v1  ;;  %1187 = vmatmul.msk.f32.gmra.mxu3 %vm123_vm0, %v1482_v1 }
 0x108   :  { %1207 = vmatmul.msk.f32.gmra.mxu0 %vm123_vm0, %v1482_v1  ;;  %1211 = vmatmul.msk.f32.gmra.mxu1 %vm123_vm0, %v1482_v1 }
 0x10f   :  { %1196 = vmatmul.msk.f32.vlgmr.msra.gmra.mxu2 %vm123_vm0, %v1455_v56  ;;  %1200 = vmatmul.msk.f32.vlgmr.msra.gmra.mxu3 %vm123_vm0, %v1455_v56 }
 0x112   :  { %v335_v24 = vpop.f32.mrf.mxu2  ;;  %v364_v25 = vpop.f32.mrf.mxu3 }
 0x117   :  { %1197 = vmatmul.msk.f32.gmra.mxu2 %vm123_vm0, %v1464_v59  ;;  %1201 = vmatmul.msk.f32.gmra.mxu3 %vm123_vm0, %v1464_v59 }
 0x11a   :  { %v338_v26 = vpop.f32.mrf.mxu2  ;;  %v367_v27 = vpop.f32.mrf.mxu3 }
 0x11f   :  { %1198 = vmatmul.msk.f32.gmra.mxu2 %vm123_vm0, %v1473_v62  ;;  %1202 = vmatmul.msk.f32.gmra.mxu3 %vm123_vm0, %v1473_v62 }
 0x122   :  { %v341_v28 = vpop.f32.mrf.mxu2  ;;  %v370_v29 = vpop.f32.mrf.mxu3 }
 0x123   :  { %v798_v30 = vsub.f32 %v364_v25, %v341_v28  ;;  %v782_v31 = vadd.f32 %v370_v29, %v335_v24 }
 0x125   :  { %v830_v32 = vmul.f32 %v798_v30, %v798_v30  ;;  %v814_v33 = vmul.f32 %v782_v31, %v782_v31 }
 0x127   :  { %v1580_v34 = vadd.f32 %v830_v32, %v814_v33  ;;  %1199 = vmatmul.msk.f32.gmra.mxu2 %vm123_vm0, %v1482_v1  ;;  %1203 = vmatmul.msk.f32.gmra.mxu3 %vm123_vm0, %v1482_v1 }
 0x129   :  { %1223 = vrsqrt.f32 %v1580_v34  ;;  %vm869_vm1 = vcmp.eq.f32.partialorder %v1580_v34, inf  ;;  %v872_v24 = vand.u32 2147483648, %v1580_v34  ;;  %vm871_vm3 = vcmp.eq.f32.partialorder %v1580_v34, 0.0 }
 0x12a   :  { %v344_v35 = vpop.f32.mrf.mxu2  ;;  %v373_v36 = vpop.f32.mrf.mxu3 }
 0x12b   :  { %v799_v37 = vsub.f32 %v367_v27, %v344_v35  ;;  %v783_v38 = vadd.f32 %v373_v36, %v338_v26 }
 0x12d   :  { %v831_v39 = vmul.f32 %v799_v37, %v799_v37  ;;  %v815_v40 = vmul.f32 %v783_v38, %v783_v38 }
 0x12f   :  { %v1586_v41 = vadd.f32 %v831_v39, %v815_v40  ;;  %1212 = vmatmul.msk.f32.vlgmr.msrb.gmra.mxu2 %vm123_vm0, %v1455_v56  ;;  %1216 = vmatmul.msk.f32.vlgmr.msrb.gmra.mxu3 %vm123_vm0, %v1455_v56  ;;  %v1224_v46 = vpop.eup %1223 }
 0x130   :  { %v863_v47 = vmul.f32 %v1224_v46, %v1580_v34 }
 0x131   :  { %1225 = vrsqrt.f32 %v1586_v41  ;;  %vm881_vm5 = vcmp.eq.f32.partialorder %v1586_v41, inf  ;;  %v884_v38 = vand.u32 2147483648, %v1586_v41  ;;  %vm883_vm7 = vcmp.eq.f32.partialorder %v1586_v41, 0.0 }
 0x132   :  { %v393_v42 = vpop.f32.mrf.mxu2  ;;  %v422_v43 = vpop.f32.mrf.mxu3  ;;  %v864_v54 = vmul.f32 %v1224_v46, %v863_v47 }
 0x134   :  { %v865_v60 = vmul.f32 0.5, %v864_v54 }
 0x136   :  { %v866_v2 = vsub.f32 1.5, %v865_v60 }
 0x137   :  { %1213 = vmatmul.msk.f32.gmra.mxu2 %vm123_vm0, %v1464_v59  ;;  %1217 = vmatmul.msk.f32.gmra.mxu3 %vm123_vm0, %v1464_v59  ;;  %v1226_v55 = vpop.eup %1225 }
 0x138   :  { %v875_v57 = vmul.f32 %v1226_v55, %v1586_v41  ;;  %v867_v9 = vmul.f32 %v1224_v46, %v866_v2 }
 0x13a   :  { %v396_v44 = vpop.f32.mrf.mxu2  ;;  %v425_v45 = vpop.f32.mrf.mxu3  ;;  %v876_v3 = vmul.f32 %v1226_v55, %v875_v57  ;;  %v868_v12 = vmul.f32 %v867_v9, %v1580_v34 }
 0x13c   :  { %v870_v20 = vsel %vm869_vm1, %v1580_v34, %v868_v12 }
 0x13d   :  { %v873_v28 = vsel %vm871_vm3, %v872_v24, %v870_v20 }
 0x13f   :  { %1214 = vmatmul.msk.f32.gmra.mxu2 %vm123_vm0, %v1473_v62  ;;  %1218 = vmatmul.msk.f32.gmra.mxu3 %vm123_vm0, %v1473_v62 }
 0x142   :  { %v399_v48 = vpop.f32.mrf.mxu2  ;;  %v428_v49 = vpop.f32.mrf.mxu3 }
 0x143   :  { %v800_v50 = vsub.f32 %v422_v43, %v399_v48  ;;  %v784_v51 = vadd.f32 %v428_v49, %v393_v42 }
 0x145   :  { %v832_v52 = vmul.f32 %v800_v50, %v800_v50  ;;  %v816_v53 = vmul.f32 %v784_v51, %v784_v51 }
 0x147   :  { %v848_v56 = vadd.f32 %v832_v52, %v816_v53  ;;  %1215 = vmatmul.msk.f32.gmra.mxu2 %vm123_vm0, %v1482_v1  ;;  %1219 = vmatmul.msk.f32.gmra.mxu3 %vm123_vm0, %v1482_v1  ;;  %v877_v1 = vmul.f32 0.5, %v876_v3 }
 0x149   :  { %1227 = vrsqrt.f32 %v848_v56  ;;  %v878_v13 = vsub.f32 1.5, %v877_v1  ;;  %vm893_vm2 = vcmp.eq.f32.partialorder %v848_v56, inf  ;;  %v896_v25 = vand.u32 2147483648, %v848_v56 }
 0x14a   :  { %v402_v58 = vpop.f32.mrf.mxu2  ;;  %v431_v59 = vpop.f32.mrf.mxu3  ;;  %vm895_vm4 = vcmp.eq.f32.partialorder %v848_v56, 0.0 }
 0x14b   :  { %v801_v61 = vsub.f32 %v425_v45, %v402_v58  ;;  %v785_v62 = vadd.f32 %v431_v59, %v396_v44  ;;  %v879_v21 = vmul.f32 %v1226_v55, %v878_v13 }
 0x14d   :  { %v833_v63 = vmul.f32 %v801_v61, %v801_v61  ;;  %v817_v0 = vmul.f32 %v785_v62, %v785_v62  ;;  %v880_v30 = vmul.f32 %v879_v21, %v1586_v41  ;;  %v1618_v50 = vpop.f32.mrf.mxu0  ;;  %v1620_v51 = vpop.f32.mrf.mxu1 }
 0x14f   :  { %v1228_v4 = vpop.eup %1227  ;;  %v849_v5 = vadd.f32 %v833_v63, %v817_v0  ;;  %v882_v37 = vsel %vm881_vm5, %v1586_v41, %v880_v30 }
 0x150   :  { %v887_v6 = vmul.f32 %v1228_v4, %v848_v56  ;;  %v885_v46 = vsel %vm883_vm7, %v884_v38, %v882_v37 }
 0x151   :  { %1229 = vrsqrt.f32 %v849_v5  ;;  %vm905_vm6 = vcmp.eq.f32.partialorder %v849_v5, inf  ;;  %v908_v42 = vand.u32 2147483648, %v849_v5  ;;  %vm907_vm8 = vcmp.eq.f32.partialorder %v849_v5, 0.0 }
 0x152   :  { %v451_v7 = vpop.f32.mrf.mxu2  ;;  %v480_v8 = vpop.f32.mrf.mxu3  ;;  %v888_v10 = vmul.f32 %v1228_v4, %v887_v6 }
 0x154   :  { %v889_v11 = vmul.f32 0.5, %v888_v10 }
 0x155   :  { %v1622_v63 = vpop.f32.mrf.mxu0  ;;  %v1624_v0 = vpop.f32.mrf.mxu1 }
 0x156   :  { %v890_v14 = vsub.f32 1.5, %v889_v11 }
 0x157   :  { %v1230_v15 = vpop.eup %1229 }
 0x158   :  { %v899_v16 = vmul.f32 %v1230_v15, %v849_v5  ;;  %v891_v17 = vmul.f32 %v1228_v4, %v890_v14 }
 0x15a   :  { %v454_v18 = vpop.f32.mrf.mxu2  ;;  %v483_v19 = vpop.f32.mrf.mxu3  ;;  %v892_v22 = vmul.f32 %v891_v17, %v848_v56  ;;  %v900_v23 = vmul.f32 %v1230_v15, %v899_v16 }
 0x15c   :  { %v894_v26 = vsel %vm893_vm2, %v848_v56, %v892_v22  ;;  %v901_v27 = vmul.f32 0.5, %v900_v23 }
 0x15d   :  { %v897_v29 = vsel %vm895_vm4, %v896_v25, %v894_v26  ;;  %v1626_v13 = vpop.f32.mrf.mxu0  ;;  %v1628_v14 = vpop.f32.mrf.mxu1 }
 0x15e   :  { %v902_v31 = vsub.f32 1.5, %v901_v27  ;;  %v1056_v32 = vadd.f32 %v897_v29, %v873_v28 }
 0x160   :  { %v903_v33 = vmul.f32 %v1230_v15, %v902_v31 }
 0x162   :  { %v457_v35 = vpop.f32.mrf.mxu2  ;;  %v486_v36 = vpop.f32.mrf.mxu3  ;;  %v904_v39 = vmul.f32 %v903_v33, %v849_v5 }
 0x163   :  { %v802_v34 = vsub.f32 %v480_v8, %v457_v35  ;;  %v786_v40 = vadd.f32 %v486_v36, %v451_v7 }
 0x164   :  { %v906_v43 = vsel %vm905_vm6, %v849_v5, %v904_v39 }
 0x165   :  { %v834_v44 = vmul.f32 %v802_v34, %v802_v34  ;;  %v818_v45 = vmul.f32 %v786_v40, %v786_v40  ;;  %v909_v47 = vsel %vm907_vm8, %v908_v42, %v906_v43  ;;  %v576_v31 = vpop.f32.mrf.mxu0  ;;  %v605_v33 = vpop.f32.mrf.mxu1 }
 0x166   :  { %v1063_v48 = vadd.f32 %v909_v47, %v885_v46 }
 0x167   :  { %v850_v49 = vadd.f32 %v834_v44, %v818_v45 }
 0x169   :  { %1231 = vrsqrt.f32 %v850_v49  ;;  %vm917_vm9 = vcmp.eq.f32.partialorder %v850_v49, inf  ;;  %v920_v10 = vand.u32 2147483648, %v850_v49  ;;  %vm919_vm10 = vcmp.eq.f32.partialorder %v850_v49, 0.0 }
 0x16a   :  { %v460_v52 = vpop.f32.mrf.mxu2  ;;  %v489_v53 = vpop.f32.mrf.mxu3 }
 0x16b   :  { %v803_v54 = vsub.f32 %v483_v19, %v460_v52  ;;  %v787_v55 = vadd.f32 %v489_v53, %v454_v18 }
 0x16d   :  { %v835_v56 = vmul.f32 %v803_v54, %v803_v54  ;;  %v819_v57 = vmul.f32 %v787_v55, %v787_v55  ;;  %v683_v43 = vpop.f32.mrf.mxu0  ;;  %v712_v44 = vpop.f32.mrf.mxu1 }
 0x16f   :  { %v1232_v41 = vpop.eup %1231  ;;  %v851_v58 = vadd.f32 %v835_v56, %v819_v57 }
 0x170   :  { %v911_v59 = vmul.f32 %v1232_v41, %v850_v49 }
 0x171   :  { %1233 = vrsqrt.f32 %v851_v58  ;;  %vm929_vm11 = vcmp.eq.f32.partialorder %v851_v58, inf  ;;  %v932_v24 = vand.u32 2147483648, %v851_v58  ;;  %vm931_vm12 = vcmp.eq.f32.partialorder %v851_v58, 0.0 }
 0x172   :  { %v509_v60 = vpop.f32.mrf.mxu2  ;;  %v538_v61 = vpop.f32.mrf.mxu3  ;;  %v912_v62 = vmul.f32 %v1232_v41, %v911_v59 }
 0x174   :  { %v913_v2 = vmul.f32 0.5, %v912_v62 }
 0x175   :  { %v686_v59 = vpop.f32.mrf.mxu0 }
 0x176   :  { %v914_v3 = vsub.f32 1.5, %v913_v2 }
 0x177   :  { %v1234_v4 = vpop.eup %1233 }
 0x178   :  { %v923_v5 = vmul.f32 %v1234_v4, %v851_v58  ;;  %v915_v6 = vmul.f32 %v1232_v41, %v914_v3 }
 0x17a   :  { %v512_v7 = vpop.f32.mrf.mxu2  ;;  %v541_v8 = vpop.f32.mrf.mxu3  ;;  %v916_v9 = vmul.f32 %v915_v6, %v850_v49  ;;  %v924_v1 = vmul.f32 %v1234_v4, %v923_v5 }
 0x17c   :  { %v918_v11 = vsel %vm917_vm9, %v850_v49, %v916_v9  ;;  %v925_v12 = vmul.f32 0.5, %v924_v1 }
 0x17d   :  { %v921_v15 = vsel %vm919_vm10, %v920_v10, %v918_v11  ;;  %v689_v11 = vpop.f32.mrf.mxu0 }
 0x17e   :  { %v926_v16 = vsub.f32 1.5, %v925_v12  ;;  %v1057_v17 = vadd.f32 %v1056_v32, %v921_v15 }
 0x180   :  { %v927_v18 = vmul.f32 %v1234_v4, %v926_v16  ;;  %v806_v16 = vsub.f32 %v1620_v51, %v1626_v13 }
 0x182   :  { %v515_v19 = vpop.f32.mrf.mxu2  ;;  %v544_v20 = vpop.f32.mrf.mxu3  ;;  %v928_v21 = vmul.f32 %v927_v18, %v851_v58  ;;  %v807_v18 = vsub.f32 %v1624_v0, %v576_v31 }
 0x183   :  { %v804_v22 = vsub.f32 %v538_v61, %v515_v19  ;;  %v788_v23 = vadd.f32 %v544_v20, %v509_v60  ;;  %v715_v60 = vpop.f32.mrf.mxu1  ;;  %v791_v19 = vadd.f32 %v605_v33, %v1622_v63 }
 0x184   :  { %v930_v25 = vsel %vm929_vm11, %v851_v58, %v928_v21 }
 0x185   :  { %v836_v26 = vmul.f32 %v804_v22, %v804_v22  ;;  %v820_v27 = vmul.f32 %v788_v23, %v788_v23  ;;  %v933_v28 = vsel %vm931_vm12, %v932_v24, %v930_v25  ;;  %v838_v24 = vmul.f32 %v806_v16, %v806_v16 }
 0x186   :  { %v1064_v29 = vadd.f32 %v1063_v48, %v933_v28 }
 0x187   :  { %v852_v30 = vadd.f32 %v836_v26, %v820_v27  ;;  %v839_v26 = vmul.f32 %v807_v18, %v807_v18  ;;  %v823_v27 = vmul.f32 %v791_v19, %v791_v19 }
 0x189   :  { %1235 = vrsqrt.f32 %v852_v30  ;;  %vm941_vm13 = vcmp.eq.f32.partialorder %v852_v30, inf  ;;  %v944_v58 = vand.u32 2147483648, %v852_v30  ;;  %vm943_vm14 = vcmp.eq.f32.partialorder %v852_v30, 0.0 }
 0x18a   :  { %v518_v35 = vpop.f32.mrf.mxu2  ;;  %v547_v32 = vpop.f32.mrf.mxu3 }
 0x18b   :  { %v805_v36 = vsub.f32 %v541_v8, %v518_v35  ;;  %v789_v37 = vadd.f32 %v547_v32, %v512_v7  ;;  %v718_v12 = vpop.f32.mrf.mxu1 }
 0x18c   :  { %v794_v35 = vadd.f32 %v718_v12, %v683_v43 }
 0x18d   :  { %v837_v38 = vmul.f32 %v805_v36, %v805_v36  ;;  %v821_v39 = vmul.f32 %v789_v37, %v789_v37 }
 0x18e   :  { %v826_v36 = vmul.f32 %v794_v35, %v794_v35 }
 0x18f   :  { %v1236_v34 = vpop.eup %1235  ;;  %v853_v40 = vadd.f32 %v837_v38, %v821_v39 }
 0x190   :  { %v935_v42 = vmul.f32 %v1236_v34, %v852_v30 }
 0x191   :  { %1237 = vrsqrt.f32 %v853_v40  ;;  %vm953_vm15 = vcmp.eq.f32.partialorder %v853_v40, inf  ;;  %v956_v9 = vand.u32 2147483648, %v853_v40  ;;  %vm955_vm0 = vcmp.eq.f32.partialorder %v853_v40, 0.0 }
 0x192   :  { %v625_v45 = vpop.f32.mrf.mxu2  ;;  %v654_v46 = vpop.f32.mrf.mxu3  ;;  %v936_v47 = vmul.f32 %v1236_v34, %v935_v42 }
 0x193   :  { %v721_v0 = vpop.f32.mrf.mxu1 }
 0x194   :  { %v937_v48 = vmul.f32 0.5, %v936_v47 }
 0x196   :  { %v938_v49 = vsub.f32 1.5, %v937_v48 }
 0x197   :  { %v1238_v52 = vpop.eup %1237 }
 0x198   :  { %v939_v53 = vmul.f32 %v1236_v34, %v938_v49  ;;  %v947_v54 = vmul.f32 %v1238_v52, %v853_v40 }
 0x19a   :  { %v628_v55 = vpop.f32.mrf.mxu2  ;;  %v657_v56 = vpop.f32.mrf.mxu3  ;;  %v940_v57 = vmul.f32 %v939_v53, %v852_v30  ;;  %v948_v41 = vmul.f32 %v1238_v52, %v947_v54 }
 0x19c   :  { %v942_v61 = vsel %vm941_vm13, %v852_v30, %v940_v57  ;;  %v949_v62 = vmul.f32 0.5, %v948_v41  ;;  %v810_v30 = vsub.f32 %v712_v44, %v689_v11 }
 0x19d   :  { %v945_v2 = vsel %vm943_vm14, %v944_v58, %v942_v61 }
 0x19e   :  { %v950_v3 = vsub.f32 1.5, %v949_v62  ;;  %v1630_v4 = vadd.f32 %v1057_v17, %v945_v2  ;;  %v790_v17 = vadd.f32 %v1628_v14, %v1618_v50  ;;  %v692_v50 = vpop.f32.mrf.mxu0  ;;  %v1642_v14 = vadd.f32 %v839_v26, %v823_v27 }
 0x19f   :  { %v842_v33 = vmul.f32 %v810_v30, %v810_v30  ;;  %v811_v34 = vsub.f32 %v715_v60, %v692_v50 }
 0x1a0   :  { %v951_v5 = vmul.f32 %v1238_v52, %v950_v3  ;;  %v822_v25 = vmul.f32 %v790_v17, %v790_v17  ;;  %vm977_vm2 = vcmp.eq.f32.partialorder %v1642_v14, inf  ;;  %vm979_vm4 = vcmp.eq.f32.partialorder %v1642_v14, 0.0 }
 0x1a1   :  { %v1650_v43 = vadd.f32 %v842_v33, %v826_v36  ;;  %v843_v44 = vmul.f32 %v811_v34, %v811_v34 }
 0x1a2   :  { %v631_v6 = vpop.f32.mrf.mxu2  ;;  %v660_v7 = vpop.f32.mrf.mxu3  ;;  %v952_v8 = vmul.f32 %v951_v5, %v853_v40  ;;  %v1640_v32 = vadd.f32 %v838_v24, %v822_v25 }
 0x1a3   :  { %v808_v22 = vsub.f32 %v654_v46, %v631_v6  ;;  %v792_v23 = vadd.f32 %v660_v7, %v625_v45  ;;  %vm1013_vm6 = vcmp.eq.f32.partialorder %v1650_v43, inf  ;;  %vm1015_vm10 = vcmp.eq.f32.partialorder %v1650_v43, 0.0 }
 0x1a4   :  { %v954_v1 = vsel %vm953_vm15, %v853_v40, %v952_v8  ;;  %v795_v40 = vadd.f32 %v721_v0, %v686_v59  ;;  %1239 = vrsqrt.f32 %v1640_v32  ;;  %vm965_vm1 = vcmp.eq.f32.partialorder %v1640_v32, inf }
 0x1a5   :  { %v957_v10 = vsel %vm955_vm0, %v956_v9, %v954_v1  ;;  %v840_v51 = vmul.f32 %v808_v22, %v808_v22  ;;  %v824_v13 = vmul.f32 %v792_v23, %v792_v23  ;;  %1241 = vrsqrt.f32 %v1642_v14 }
 0x1a6   :  { %v1632_v15 = vadd.f32 %v1064_v29, %v957_v10  ;;  %v827_v45 = vmul.f32 %v795_v40, %v795_v40  ;;  %vm967_vm3 = vcmp.eq.f32.partialorder %v1640_v32, 0.0 }
 0x1a7   :  { %v1644_v39 = vadd.f32 %v840_v51, %v824_v13 }
 0x1a8   :  { %v1655_v52 = vadd.f32 %v843_v44, %v827_v45 }
 0x1a9   :  { %1243 = vrsqrt.f32 %v1644_v39  ;;  %vm989_vm5 = vcmp.eq.f32.partialorder %v1644_v39, inf  ;;  %vm991_vm8 = vcmp.eq.f32.partialorder %v1644_v39, 0.0 }
 0x1aa   :  { %v634_v20 = vpop.f32.mrf.mxu2  ;;  %v663_v21 = vpop.f32.mrf.mxu3  ;;  %vm1025_vm11 = vcmp.eq.f32.partialorder %v1655_v52, inf  ;;  %vm1027_vm13 = vcmp.eq.f32.partialorder %v1655_v52, 0.0 }
 0x1ab   :  { %v809_v28 = vsub.f32 %v657_v56, %v634_v20  ;;  %v793_v29 = vadd.f32 %v663_v21, %v628_v55  ;;  %v1240_v46 = vpop.eup %1239 }
 0x1ac   :  { %v1242_v49 = vpop.eup %1241  ;;  %v959_v54 = vmul.f32 %v1240_v46, %v1640_v32 }
 0x1ad   :  { %v841_v63 = vmul.f32 %v809_v28, %v809_v28  ;;  %v825_v31 = vmul.f32 %v793_v29, %v793_v29  ;;  %v971_v55 = vmul.f32 %v1242_v49, %v1642_v14 }
 0x1ae   :  { %v960_v58 = vmul.f32 %v1240_v46, %v959_v54 }
 0x1af   :  { %v1648_v42 = vadd.f32 %v841_v63, %v825_v31  ;;  %v1244_v53 = vpop.eup %1243  ;;  %v972_v61 = vmul.f32 %v1242_v49, %v971_v55 }
 0x1b0   :  { %v983_v41 = vmul.f32 %v1244_v53, %v1644_v39  ;;  %v961_v1 = vmul.f32 0.5, %v960_v58 }
 0x1b1   :  { %1245 = vrsqrt.f32 %v1648_v42  ;;  %v973_v10 = vmul.f32 0.5, %v972_v61  ;;  %vm1001_vm7 = vcmp.eq.f32.partialorder %v1648_v42, inf  ;;  %vm1003_vm9 = vcmp.eq.f32.partialorder %v1648_v42, 0.0 }
 0x1b2   :  { %v741_v37 = vpop.f32.mrf.mxu2  ;;  %v770_v38 = vpop.f32.mrf.mxu3  ;;  %1247 = vrsqrt.f32 %v1650_v43  ;;  %v984_v6 = vmul.f32 %v1244_v53, %v983_v41  ;;  %v962_v19 = vsub.f32 1.5, %v961_v1 }
 0x1b3   :  { %1249 = vrsqrt.f32 %v1655_v52  ;;  %v974_v22 = vsub.f32 1.5, %v973_v10 }
 0x1b4   :  { %v985_v17 = vmul.f32 0.5, %v984_v6  ;;  %v963_v35 = vmul.f32 %v1240_v46, %v962_v19 }
 0x1b5   :  { %v975_v51 = vmul.f32 %v1242_v49, %v974_v22  ;;  %v968_v49 = vand.u32 2147483648, %v1640_v32 }
 0x1b6   :  { %v986_v27 = vsub.f32 1.5, %v985_v17 }
 0x1b7   :  { %v1246_v56 = vpop.eup %1245 }
 0x1b8   :  { %v1248_v57 = vpop.eup %1247  ;;  %v995_v62 = vmul.f32 %v1246_v56, %v1648_v42  ;;  %v987_v31 = vmul.f32 %v1244_v53, %v986_v27  ;;  %v980_v53 = vand.u32 2147483648, %v1642_v14 }
 0x1b9   :  { %v1007_v5 = vmul.f32 %v1248_v57, %v1650_v43  ;;  %v1250_v7 = vpop.eup %1249 }
 0x1ba   :  { %v744_v47 = vpop.f32.mrf.mxu2  ;;  %v773_v48 = vpop.f32.mrf.mxu3  ;;  %v996_v11 = vmul.f32 %v1246_v56, %v995_v62  ;;  %v1019_v18 = vmul.f32 %v1250_v7, %v1655_v52  ;;  %v988_v45 = vmul.f32 %v987_v31, %v1644_v39 }
 0x1bb   :  { %v1008_v16 = vmul.f32 %v1248_v57, %v1007_v5 }
 0x1bc   :  { %v997_v23 = vmul.f32 0.5, %v996_v11  ;;  %v1020_v28 = vmul.f32 %v1250_v7, %v1019_v18  ;;  %v990_v58 = vsel %vm989_vm5, %v1644_v39, %v988_v45 }
 0x1bd   :  { %v1009_v26 = vmul.f32 0.5, %v1008_v16 }
 0x1be   :  { %v998_v13 = vsub.f32 1.5, %v997_v23  ;;  %v1021_v33 = vmul.f32 0.5, %v1020_v28 }
 0x1bf   :  { %v1010_v63 = vsub.f32 1.5, %v1009_v26 }
 0x1c0   :  { %v999_v34 = vmul.f32 %v1246_v56, %v998_v13  ;;  %v1022_v46 = vsub.f32 1.5, %v1021_v33 }
 0x1c1   :  { %v1011_v44 = vmul.f32 %v1248_v57, %v1010_v63 }
 0x1c2   :  { %v747_v59 = vpop.f32.mrf.mxu2  ;;  %v776_v60 = vpop.f32.mrf.mxu3  ;;  %v1000_v55 = vmul.f32 %v999_v34, %v1648_v42 }
 0x1c3   :  { %v812_v2 = vsub.f32 %v770_v38, %v747_v59  ;;  %v796_v3 = vadd.f32 %v776_v60, %v741_v37  ;;  %v964_v37 = vmul.f32 %v963_v35, %v1640_v32  ;;  %v976_v38 = vmul.f32 %v975_v51, %v1642_v14 }
 0x1c4   :  { %v1012_v41 = vmul.f32 %v1011_v44, %v1650_v43  ;;  %v1023_v59 = vmul.f32 %v1250_v7, %v1022_v46 }
 0x1c5   :  { %v844_v8 = vmul.f32 %v812_v2, %v812_v2  ;;  %v828_v9 = vmul.f32 %v796_v3, %v796_v3  ;;  %v978_v54 = vsel %vm977_vm2, %v1642_v14, %v976_v38  ;;  %v992_v14 = vand.u32 2147483648, %v1644_v39 }
 0x1c6   :  { %v981_v62 = vsel %vm979_vm4, %v980_v53, %v978_v54  ;;  %v1002_v2 = vsel %vm1001_vm7, %v1648_v42, %v1000_v55  ;;  %v1014_v7 = vsel %vm1013_vm6, %v1650_v43, %v1012_v41  ;;  %v1024_v1 = vmul.f32 %v1023_v59, %v1655_v52 }
 0x1c7   :  { %v1663_v12 = vadd.f32 %v844_v8, %v828_v9  ;;  %v993_v6 = vsel %vm991_vm8, %v992_v14, %v990_v58  ;;  %v1004_v8 = vand.u32 2147483648, %v1648_v42  ;;  %v1016_v9 = vand.u32 2147483648, %v1650_v43 }
 0x1c8   :  { %v1066_v19 = vadd.f32 %v1632_v15, %v981_v62  ;;  %v1028_v42 = vand.u32 2147483648, %v1655_v52 }
 0x1c9   :  { %1251 = vrsqrt.f32 %v1663_v12  ;;  %v1005_v39 = vsel %vm1003_vm9, %v1004_v8, %v1002_v2  ;;  %vm1037_vm12 = vcmp.eq.f32.partialorder %v1663_v12, inf  ;;  %vm1039_vm14 = vcmp.eq.f32.partialorder %v1663_v12, 0.0 }
 0x1ca   :  { %v750_v20 = vpop.f32.mrf.mxu2  ;;  %v779_v21 = vpop.f32.mrf.mxu3  ;;  %v1017_v22 = vsel %vm1015_vm10, %v1016_v9, %v1014_v7 }
 0x1cb   :  { %v813_v24 = vsub.f32 %v773_v48, %v750_v20  ;;  %v797_v25 = vadd.f32 %v779_v21, %v744_v47  ;;  %v966_v48 = vsel %vm965_vm1, %v1640_v32, %v964_v37  ;;  %v1040_v20 = vand.u32 2147483648, %v1663_v12 }
 0x1cc   :  { %v969_v61 = vsel %vm967_vm3, %v968_v49, %v966_v48  ;;  %v1067_v21 = vadd.f32 %v1066_v19, %v1005_v39  ;;  %vm1094_vm1 = vcmask 0  }
 0x1cd   :  { %v845_v29 = vmul.f32 %v813_v24, %v813_v24  ;;  %v829_v30 = vmul.f32 %v797_v25, %v797_v25  ;;  %v1059_v11 = vadd.f32 %v1630_v4, %v969_v61  ;;  %v1026_v4 = vsel %vm1025_vm11, %v1655_v52, %v1024_v1 }
 0x1ce   :  { %v1029_v26 = vsel %vm1027_vm13, %v1028_v42, %v1026_v4 }
 0x1cf   :  { %v1252_v50 = vpop.eup %1251  ;;  %v1667_v0 = vadd.f32 %v845_v29, %v829_v30  ;;  %v1060_v18 = vadd.f32 %v1059_v11, %v993_v6  ;;  %v1068_v52 = vadd.f32 %v1067_v21, %v1029_v26  ;;  %v1080_v30 = vld [vmem:[%s1727_s4 + $0x8] sm:$0xff] }
 0x1d0   :  { %v1031_v36 = vmul.f32 %v1252_v50, %v1663_v12 }
 0x1d1   :  { %1253 = vrsqrt.f32 %v1667_v0  ;;  %v1061_v25 = vadd.f32 %v1060_v18, %v1017_v22  ;;  %vm1049_vm15 = vcmp.eq.f32.partialorder %v1667_v0, inf  ;;  %v1052_v15 = vand.u32 2147483648, %v1667_v0 }
 0x1d2   :  { %v1032_v40 = vmul.f32 %v1252_v50, %v1031_v36  ;;  %vm1051_vm0 = vcmp.eq.f32.partialorder %v1667_v0, 0.0 }
 0x1d4   :  { %v1033_v47 = vmul.f32 0.5, %v1032_v40 }
 0x1d6   :  { %v1034_v56 = vsub.f32 1.5, %v1033_v47 }
 0x1d7   :  { %v1254_v57 = vpop.eup %1253 }
 0x1d8   :  { %v1035_v32 = vmul.f32 %v1252_v50, %v1034_v56  ;;  %v1043_v60 = vmul.f32 %v1254_v57, %v1667_v0 }
 0x1da   :  { %v1036_v3 = vmul.f32 %v1035_v32, %v1663_v12  ;;  %v1044_v5 = vmul.f32 %v1254_v57, %v1043_v60 }
 0x1dc   :  { %v1045_v10 = vmul.f32 0.5, %v1044_v5  ;;  %v1038_v16 = vsel %vm1037_vm12, %v1663_v12, %v1036_v3  ;;  %v1079_v12 = vld [vmem:[%s1727_s4] sm:$0xff] }
 0x1dd   :  { %v1041_v23 = vsel %vm1039_vm14, %v1040_v20, %v1038_v16 }
 0x1de   :  { %v1046_v17 = vsub.f32 1.5, %v1045_v10  ;;  %v1062_v28 = vadd.f32 %v1061_v25, %v1041_v23 }
 0x1e0   :  { %v1047_v43 = vmul.f32 %v1254_v57, %v1046_v17  ;;  %v1081_v51 = vmul.f32 %v1079_v12, %v1062_v28 }
 0x1e2   :  { %v1048_v24 = vmul.f32 %v1047_v43, %v1667_v0 }
 0x1e4   :  { %v1050_v27 = vsel %vm1049_vm15, %v1667_v0, %v1048_v24 }
 0x1e5   :  { %v1053_v29 = vsel %vm1051_vm0, %v1052_v15, %v1050_v27 }
 0x1e6   :  { %v1069_v35 = vadd.f32 %v1068_v52, %v1053_v29 }
 0x1e8   :  { %v1082_v13 = vmul.f32 %v1080_v30, %v1069_v35 }
 0x1ea   :  { %v1083_v50 = vadd.f32 %v1082_v13, %v1081_v51 }
 0x1ec   :  { %1084 = vadd.xlane.f32.xlu0 %v1083_v50 }
 0x25f   :  { %v1085_v63 = vpop.xlane.xlu0 %1084 }
 0x260   :  { %v1086_v31 = vrot.slane %v1085_v63, 4 }
 0x262   :  { %v1087_v33 = vadd.f32 %v1086_v31, %v1085_v63 }
 0x264   :  { %v1088_v0 = vrot.slane %v1087_v33, 2 }
 0x266   :  { %v1089_v36 = vadd.f32 %v1088_v0, %v1087_v33 }
 0x268   :  { %v1090_v37 = vrot.slane %v1089_v36, 1 }
 0x26a   :  { %v1091_v38 = vadd.f32 %v1090_v37, %v1089_v36 }
 0x26c   :  { %1220 = vpush %v1091_v38 }
 0x29d   :  { %s1221_s4 = spop %1220 }
 0x29e   :  { %v1093_v34 = vstv %s1221_s4 }
 0x29f   :  { %1095 = vst.msk [vmem:[#allocation3] sm:$0x1] %vm1094_vm1, %v1093_v34 }
 0x2a0   :  { %1106 = dma.vmem_to_hbm [thread:$0]  %s1102_s22, 16, %s1104_s25, [#allocation4]  }
 0x2a1   :  { %1279 = dma.done.wait [#allocation4], 16  }
 0x2a2   :  { %1280 = vsyncadd [#allocation4], 4294967280 }
 0x2a3   :  { %1111 = vsyncpa [#allocation4], 1 }

// kernel: tpu_custom_call.1
= control target key start
LH: loop header
LB: loop body
LE: loop exit
PB: predicated region body
PF: predicated region fallthrough
CT: control target
= control target key end

     0   :  { %vm123_vm0 = vcmask 130048   ;;  %s1723_s0 = inlined_call_operand.vmem [shape: f32[128,16], index: 0, kind: input, shape index: {}]   ;;  %s1724_s1 = inlined_call_operand.vmem [shape: f32[128,16], index: 1, kind: input, shape index: {}]   ;;  %s1725_s2 = inlined_call_operand.vmem [shape: f32[16,256], index: 2, kind: input, shape index: {}]   ;;  %s1726_s3 = inlined_call_operand.vmem [shape: f32[32,16], index: 3, kind: input, shape index: {}]   ;;  %s1727_s4 = inlined_call_operand.vmem [shape: f32[16,128], index: 4, kind: input, shape index: {}]   ;;  %s1728_s5 = inlined_call_operand.hbm [shape: f32[1,1,1], index: 5, kind: output, shape index: {}]  }
   0x1   :  { %v73_v0 = vld [vmem:[%s1725_s2 + $0x10] sm:$0xff]  ;;  %v74_v1 = vld [vmem:[%s1725_s2 + $0x18] sm:$0xff]  ;;  %v71_v2 = vld [vmem:[%s1725_s2] sm:$0xff] }
   0x2   :  { %186 = vmatpush.msra.mxu0 %v73_v0  ;;  %251 = vmatpush.msra.mxu1 %v74_v1  ;;  %v72_v3 = vld [vmem:[%s1725_s2 + $0x8] sm:$0xff]  ;;  %v75_v4 = vld [vmem:[%s1723_s0] sm:$0xff] }
   0x3   :  { %v91_v5 = vld [vmem:[%s1724_s1] sm:$0xff]  ;;  %v76_v7 = vld [vmem:[%s1723_s0 + $0x8] sm:$0xff] }
   0x4   :  { %v107_v6 = vsub.f32 %v75_v4, %v91_v5  ;;  %187 = vmatpush.msra.mxu0 %v71_v2  ;;  %252 = vmatpush.msra.mxu1 %v72_v3  ;;  %v92_v8 = vld [vmem:[%s1724_s1 + $0x8] sm:$0xff] }
   0x6   :  { %1124 = vmatmul.msk.f32.vlgmr.msra.gmra.mxu0 %vm123_vm0, %v107_v6  ;;  %1140 = vmatmul.msk.f32.vlgmr.msra.gmra.mxu1 %vm123_vm0, %v107_v6 }
   0x7   :  { %10 = vsyncpa [#allocation4], 0  ;;  %v108_v9 = vsub.f32 %v76_v7, %v92_v8  ;;  %v77_v10 = vld [vmem:[%s1723_s0 + $0x10] sm:$0xff]  ;;  %v78_v13 = vld [vmem:[%s1723_s0 + $0x18] sm:$0xff]  ;;  %s1281_s21 = smov [#allocation3]   ;;  %s1103_s25 = sshll.u32 %s1728_s5, 4  ;;  %s1104_s25 = int_to_ptr.hbm [resolvable:$true] %s1103_s25 }
   0x8   :  { %v93_v11 = vld [vmem:[%s1724_s1 + $0x10] sm:$0xff]  ;;  %v94_v14 = vld [vmem:[%s1724_s1 + $0x18] sm:$0xff]  ;;  %v79_v16 = vld [vmem:[%s1723_s0 + $0x20] sm:$0xff]  ;;  %s1101_s22 = sshll.u32 %s1281_s21, 4  ;;  %s1102_s22 = int_to_ptr.vmem [resolvable:$true] %s1101_s22 }
   0x9   :  { %v109_v12 = vsub.f32 %v77_v10, %v93_v11  ;;  %v110_v15 = vsub.f32 %v78_v13, %v94_v14  ;;  %v95_v17 = vld [vmem:[%s1724_s1 + $0x20] sm:$0xff]  ;;  %v80_v19 = vld [vmem:[%s1723_s0 + $0x28] sm:$0xff]  ;;  %v81_v22 = vld [vmem:[%s1723_s0 + $0x30] sm:$0xff] }
   0xa   :  { %v111_v18 = vsub.f32 %v79_v16, %v95_v17  ;;  %v96_v20 = vld [vmem:[%s1724_s1 + $0x28] sm:$0xff]  ;;  %v97_v23 = vld [vmem:[%s1724_s1 + $0x30] sm:$0xff]  ;;  %v82_v25 = vld [vmem:[%s1723_s0 + $0x38] sm:$0xff] }
   0xb   :  { %v112_v21 = vsub.f32 %v80_v19, %v96_v20  ;;  %v113_v24 = vsub.f32 %v81_v22, %v97_v23  ;;  %v98_v26 = vld [vmem:[%s1724_s1 + $0x38] sm:$0xff]  ;;  %v83_v28 = vld [vmem:[%s1723_s0 + $0x40] sm:$0xff]  ;;  %v84_v31 = vld [vmem:[%s1723_s0 + $0x48] sm:$0xff] }
   0xc   :  { %v114_v27 = vsub.f32 %v82_v25, %v98_v26  ;;  %v99_v29 = vld [vmem:[%s1724_s1 + $0x40] sm:$0xff]  ;;  %v100_v32 = vld [vmem:[%s1724_s1 + $0x48] sm:$0xff]  ;;  %v85_v34 = vld [vmem:[%s1723_s0 + $0x50] sm:$0xff] }
   0xd   :  { %v115_v30 = vsub.f32 %v83_v28, %v99_v29  ;;  %v116_v33 = vsub.f32 %v84_v31, %v100_v32  ;;  %v101_v35 = vld [vmem:[%s1724_s1 + $0x50] sm:$0xff]  ;;  %v86_v37 = vld [vmem:[%s1723_s0 + $0x58] sm:$0xff]  ;;  %v87_v40 = vld [vmem:[%s1723_s0 + $0x60] sm:$0xff] }
   0xe   :  { %1125 = vmatmul.msk.f32.gmra.mxu0 %vm123_vm0, %v108_v9  ;;  %1141 = vmatmul.msk.f32.gmra.mxu1 %vm123_vm0, %v108_v9  ;;  %v117_v36 = vsub.f32 %v85_v34, %v101_v35  ;;  %v102_v38 = vld [vmem:[%s1724_s1 + $0x58] sm:$0xff]  ;;  %v103_v41 = vld [vmem:[%s1724_s1 + $0x60] sm:$0xff]  ;;  %v88_v43 = vld [vmem:[%s1723_s0 + $0x68] sm:$0xff] }
   0xf   :  { %v118_v39 = vsub.f32 %v86_v37, %v102_v38  ;;  %v119_v42 = vsub.f32 %v87_v40, %v103_v41  ;;  %v104_v44 = vld [vmem:[%s1724_s1 + $0x68] sm:$0xff]  ;;  %v89_v46 = vld [vmem:[%s1723_s0 + $0x70] sm:$0xff]  ;;  %v90_v49 = vld [vmem:[%s1723_s0 + $0x78] sm:$0xff] }
  0x10   :  { %v120_v45 = vsub.f32 %v88_v43, %v104_v44  ;;  %v105_v47 = vld [vmem:[%s1724_s1 + $0x70] sm:$0xff]  ;;  %v106_v50 = vld [vmem:[%s1724_s1 + $0x78] sm:$0xff]  ;;  %v1455_v56 = vld [vmem:[%s1726_s3] sm:$0xff] }
  0x11   :  { %v121_v48 = vsub.f32 %v89_v46, %v105_v47  ;;  %v122_v51 = vsub.f32 %v90_v49, %v106_v50  ;;  %v1464_v59 = vld [vmem:[%s1726_s3 + $0x8] sm:$0xff]  ;;  %v1473_v62 = vld [vmem:[%s1726_s3 + $0x10] sm:$0xff]  ;;  %v1482_v1 = vld [vmem:[%s1726_s3 + $0x18] sm:$0xff] }
  0x16   :  { %1126 = vmatmul.msk.f32.gmra.mxu0 %vm123_vm0, %v109_v12  ;;  %1142 = vmatmul.msk.f32.gmra.mxu1 %vm123_vm0, %v109_v12 }
  0x1e   :  { %1127 = vmatmul.msk.f32.gmra.mxu0 %vm123_vm0, %v110_v15  ;;  %1143 = vmatmul.msk.f32.gmra.mxu1 %vm123_vm0, %v110_v15 }
  0x26   :  { %1128 = vmatmul.msk.f32.gmra.mxu0 %vm123_vm0, %v111_v18  ;;  %1144 = vmatmul.msk.f32.gmra.mxu1 %vm123_vm0, %v111_v18 }
  0x2e   :  { %1129 = vmatmul.msk.f32.gmra.mxu0 %vm123_vm0, %v112_v21  ;;  %1145 = vmatmul.msk.f32.gmra.mxu1 %vm123_vm0, %v112_v21 }
  0x36   :  { %1130 = vmatmul.msk.f32.gmra.mxu0 %vm123_vm0, %v113_v24  ;;  %1146 = vmatmul.msk.f32.gmra.mxu1 %vm123_vm0, %v113_v24 }
  0x3e   :  { %1131 = vmatmul.msk.f32.gmra.mxu0 %vm123_vm0, %v114_v27  ;;  %1147 = vmatmul.msk.f32.gmra.mxu1 %vm123_vm0, %v114_v27 }
  0x46   :  { %1132 = vmatmul.msk.f32.gmra.mxu0 %vm123_vm0, %v115_v30  ;;  %1148 = vmatmul.msk.f32.gmra.mxu1 %vm123_vm0, %v115_v30 }
  0x4e   :  { %1133 = vmatmul.msk.f32.gmra.mxu0 %vm123_vm0, %v116_v33  ;;  %1149 = vmatmul.msk.f32.gmra.mxu1 %vm123_vm0, %v116_v33 }
  0x56   :  { %1134 = vmatmul.msk.f32.gmra.mxu0 %vm123_vm0, %v117_v36  ;;  %1150 = vmatmul.msk.f32.gmra.mxu1 %vm123_vm0, %v117_v36 }
  0x5e   :  { %1135 = vmatmul.msk.f32.gmra.mxu0 %vm123_vm0, %v118_v39  ;;  %1151 = vmatmul.msk.f32.gmra.mxu1 %vm123_vm0, %v118_v39 }
  0x66   :  { %1136 = vmatmul.msk.f32.gmra.mxu0 %vm123_vm0, %v119_v42  ;;  %1152 = vmatmul.msk.f32.gmra.mxu1 %vm123_vm0, %v119_v42 }
  0x6e   :  { %1137 = vmatmul.msk.f32.gmra.mxu0 %vm123_vm0, %v120_v45  ;;  %1153 = vmatmul.msk.f32.gmra.mxu1 %vm123_vm0, %v120_v45 }
  0x76   :  { %1138 = vmatmul.msk.f32.gmra.mxu0 %vm123_vm0, %v121_v48  ;;  %1154 = vmatmul.msk.f32.gmra.mxu1 %vm123_vm0, %v121_v48 }
  0x7e   :  { %1139 = vmatmul.msk.f32.gmra.mxu0 %vm123_vm0, %v122_v51  ;;  %1155 = vmatmul.msk.f32.gmra.mxu1 %vm123_vm0, %v122_v51 }
  0x83   :  { %v189_v52 = vpop.f32.mrf.mxu0  ;;  %v254_v53 = vpop.f32.mrf.mxu1 }
  0x8b   :  { %v192_v54 = vpop.f32.mrf.mxu0  ;;  %v257_v55 = vpop.f32.mrf.mxu1 }
  0x8c   :  { %332 = vmatpush.msra.mxu2 %v192_v54  ;;  %361 = vmatpush.msra.mxu3 %v257_v55 }
  0x8e   :  { %333 = vmatpush.msra.mxu2 %v189_v52  ;;  %362 = vmatpush.msra.mxu3 %v254_v53 }
  0x8f   :  { %1156 = vmatmul.msk.f32.vlgmr.msra.gmra.mxu2 %vm123_vm0, %v1455_v56  ;;  %1160 = vmatmul.msk.f32.vlgmr.msra.gmra.mxu3 %vm123_vm0, %v1455_v56 }
  0x93   :  { %v195_v57 = vpop.f32.mrf.mxu0  ;;  %v260_v58 = vpop.f32.mrf.mxu1 }
  0x97   :  { %1157 = vmatmul.msk.f32.gmra.mxu2 %vm123_vm0, %v1464_v59  ;;  %1161 = vmatmul.msk.f32.gmra.mxu3 %vm123_vm0, %v1464_v59 }
  0x9b   :  { %v198_v60 = vpop.f32.mrf.mxu0  ;;  %v263_v61 = vpop.f32.mrf.mxu1 }
  0x9c   :  { %390 = vmatpush.msrb.mxu2 %v198_v60  ;;  %419 = vmatpush.msrb.mxu3 %v263_v61 }
  0x9e   :  { %391 = vmatpush.msrb.mxu2 %v195_v57  ;;  %420 = vmatpush.msrb.mxu3 %v260_v58 }
  0x9f   :  { %1158 = vmatmul.msk.f32.gmra.mxu2 %vm123_vm0, %v1473_v62  ;;  %1162 = vmatmul.msk.f32.gmra.mxu3 %vm123_vm0, %v1473_v62 }
  0xa3   :  { %v201_v63 = vpop.f32.mrf.mxu0  ;;  %v266_v0 = vpop.f32.mrf.mxu1 }
  0xa7   :  { %1159 = vmatmul.msk.f32.gmra.mxu2 %vm123_vm0, %v1482_v1  ;;  %1163 = vmatmul.msk.f32.gmra.mxu3 %vm123_vm0, %v1482_v1 }
  0xab   :  { %v204_v2 = vpop.f32.mrf.mxu0  ;;  %v269_v3 = vpop.f32.mrf.mxu1 }
  0xac   :  { %448 = vmatpush.msra.mxu2 %v204_v2  ;;  %477 = vmatpush.msra.mxu3 %v269_v3 }
  0xae   :  { %449 = vmatpush.msra.mxu2 %v201_v63  ;;  %478 = vmatpush.msra.mxu3 %v266_v0 }
  0xaf   :  { %1164 = vmatmul.msk.f32.vlgmr.msrb.gmra.mxu2 %vm123_vm0, %v1455_v56  ;;  %1168 = vmatmul.msk.f32.vlgmr.msrb.gmra.mxu3 %vm123_vm0, %v1455_v56 }
  0xb3   :  { %v207_v4 = vpop.f32.mrf.mxu0  ;;  %v272_v5 = vpop.f32.mrf.mxu1 }
  0xb7   :  { %1165 = vmatmul.msk.f32.gmra.mxu2 %vm123_vm0, %v1464_v59  ;;  %1169 = vmatmul.msk.f32.gmra.mxu3 %vm123_vm0, %v1464_v59 }
  0xbb   :  { %v210_v6 = vpop.f32.mrf.mxu0  ;;  %v275_v7 = vpop.f32.mrf.mxu1 }
  0xbc   :  { %506 = vmatpush.msrb.mxu2 %v210_v6  ;;  %535 = vmatpush.msrb.mxu3 %v275_v7 }
  0xbe   :  { %507 = vmatpush.msrb.mxu2 %v207_v4  ;;  %536 = vmatpush.msrb.mxu3 %v272_v5 }
  0xbf   :  { %1166 = vmatmul.msk.f32.gmra.mxu2 %vm123_vm0, %v1473_v62  ;;  %1170 = vmatmul.msk.f32.gmra.mxu3 %vm123_vm0, %v1473_v62 }
  0xc3   :  { %v213_v8 = vpop.f32.mrf.mxu0  ;;  %v278_v9 = vpop.f32.mrf.mxu1 }
  0xc7   :  { %1167 = vmatmul.msk.f32.gmra.mxu2 %vm123_vm0, %v1482_v1  ;;  %1171 = vmatmul.msk.f32.gmra.mxu3 %vm123_vm0, %v1482_v1 }
  0xcb   :  { %v216_v10 = vpop.f32.mrf.mxu0  ;;  %v281_v11 = vpop.f32.mrf.mxu1 }
  0xcc   :  { %564 = vmatpush.msrb.mxu0 %v216_v10  ;;  %593 = vmatpush.msrb.mxu1 %v281_v11 }
  0xce   :  { %565 = vmatpush.msrb.mxu0 %v213_v8  ;;  %594 = vmatpush.msrb.mxu1 %v278_v9 }
  0xcf   :  { %1172 = vmatmul.msk.f32.vlgmr.msra.gmra.mxu2 %vm123_vm0, %v1455_v56  ;;  %1176 = vmatmul.msk.f32.vlgmr.msra.gmra.mxu3 %vm123_vm0, %v1455_v56 }
  0xd0   :  { %1188 = vmatmul.msk.f32.vlgmr.msrb.gmra.mxu0 %vm123_vm0, %v1455_v56  ;;  %1192 = vmatmul.msk.f32.vlgmr.msrb.gmra.mxu1 %vm123_vm0, %v1455_v56 }
  0xd3   :  { %v219_v12 = vpop.f32.mrf.mxu0  ;;  %v284_v13 = vpop.f32.mrf.mxu1 }
  0xd7   :  { %1173 = vmatmul.msk.f32.gmra.mxu2 %vm123_vm0, %v1464_v59  ;;  %1177 = vmatmul.msk.f32.gmra.mxu3 %vm123_vm0, %v1464_v59 }
  0xd8   :  { %1189 = vmatmul.msk.f32.gmra.mxu0 %vm123_vm0, %v1464_v59  ;;  %1193 = vmatmul.msk.f32.gmra.mxu1 %vm123_vm0, %v1464_v59 }
  0xdb   :  { %v222_v14 = vpop.f32.mrf.mxu0  ;;  %v287_v15 = vpop.f32.mrf.mxu1 }
  0xdc   :  { %622 = vmatpush.msra.mxu2 %v222_v14  ;;  %651 = vmatpush.msra.mxu3 %v287_v15 }
  0xde   :  { %623 = vmatpush.msra.mxu2 %v219_v12  ;;  %652 = vmatpush.msra.mxu3 %v284_v13 }
  0xdf   :  { %1174 = vmatmul.msk.f32.gmra.mxu2 %vm123_vm0, %v1473_v62  ;;  %1178 = vmatmul.msk.f32.gmra.mxu3 %vm123_vm0, %v1473_v62 }
  0xe0   :  { %1190 = vmatmul.msk.f32.gmra.mxu0 %vm123_vm0, %v1473_v62  ;;  %1194 = vmatmul.msk.f32.gmra.mxu1 %vm123_vm0, %v1473_v62 }
  0xe3   :  { %v225_v16 = vpop.f32.mrf.mxu0  ;;  %v290_v17 = vpop.f32.mrf.mxu1 }
  0xe7   :  { %1175 = vmatmul.msk.f32.gmra.mxu2 %vm123_vm0, %v1482_v1  ;;  %1179 = vmatmul.msk.f32.gmra.mxu3 %vm123_vm0, %v1482_v1 }
  0xe8   :  { %1191 = vmatmul.msk.f32.gmra.mxu0 %vm123_vm0, %v1482_v1  ;;  %1195 = vmatmul.msk.f32.gmra.mxu1 %vm123_vm0, %v1482_v1 }
  0xeb   :  { %v228_v18 = vpop.f32.mrf.mxu0  ;;  %v293_v19 = vpop.f32.mrf.mxu1 }
  0xec   :  { %680 = vmatpush.msra.mxu0 %v228_v18  ;;  %709 = vmatpush.msra.mxu1 %v293_v19 }
  0xee   :  { %681 = vmatpush.msra.mxu0 %v225_v16  ;;  %710 = vmatpush.msra.mxu1 %v290_v17 }
  0xef   :  { %1180 = vmatmul.msk.f32.vlgmr.msrb.gmra.mxu2 %vm123_vm0, %v1455_v56  ;;  %1184 = vmatmul.msk.f32.vlgmr.msrb.gmra.mxu3 %vm123_vm0, %v1455_v56 }
  0xf0   :  { %1204 = vmatmul.msk.f32.vlgmr.msra.gmra.mxu0 %vm123_vm0, %v1455_v56  ;;  %1208 = vmatmul.msk.f32.vlgmr.msra.gmra.mxu1 %vm123_vm0, %v1455_v56 }
  0xf3   :  { %v231_v20 = vpop.f32.mrf.mxu0  ;;  %v296_v21 = vpop.f32.mrf.mxu1 }
  0xf7   :  { %1181 = vmatmul.msk.f32.gmra.mxu2 %vm123_vm0, %v1464_v59  ;;  %1185 = vmatmul.msk.f32.gmra.mxu3 %vm123_vm0, %v1464_v59 }
  0xf8   :  { %1205 = vmatmul.msk.f32.gmra.mxu0 %vm123_vm0, %v1464_v59  ;;  %1209 = vmatmul.msk.f32.gmra.mxu1 %vm123_vm0, %v1464_v59 }
  0xfb   :  { %v234_v22 = vpop.f32.mrf.mxu0  ;;  %v299_v23 = vpop.f32.mrf.mxu1 }
  0xfc   :  { %738 = vmatpush.msrb.mxu2 %v234_v22  ;;  %767 = vmatpush.msrb.mxu3 %v299_v23 }
  0xfe   :  { %739 = vmatpush.msrb.mxu2 %v231_v20  ;;  %768 = vmatpush.msrb.mxu3 %v296_v21 }
  0xff   :  { %1182 = vmatmul.msk.f32.gmra.mxu2 %vm123_vm0, %v1473_v62  ;;  %1186 = vmatmul.msk.f32.gmra.mxu3 %vm123_vm0, %v1473_v62 }
 0x100   :  { %1206 = vmatmul.msk.f32.gmra.mxu0 %vm123_vm0, %v1473_v62  ;;  %1210 = vmatmul.msk.f32.gmra.mxu1 %vm123_vm0, %v1473_v62 }
 0x107   :  { %1183 = vmatmul.msk.f32.gmra.mxu2 %vm123_vm0, %v1482_v1  ;;  %1187 = vmatmul.msk.f32.gmra.mxu3 %vm123_vm0, %v1482_v1 }
 0x108   :  { %1207 = vmatmul.msk.f32.gmra.mxu0 %vm123_vm0, %v1482_v1  ;;  %1211 = vmatmul.msk.f32.gmra.mxu1 %vm123_vm0, %v1482_v1 }
 0x10f   :  { %1196 = vmatmul.msk.f32.vlgmr.msra.gmra.mxu2 %vm123_vm0, %v1455_v56  ;;  %1200 = vmatmul.msk.f32.vlgmr.msra.gmra.mxu3 %vm123_vm0, %v1455_v56 }
 0x112   :  { %v335_v24 = vpop.f32.mrf.mxu2  ;;  %v364_v25 = vpop.f32.mrf.mxu3 }
 0x117   :  { %1197 = vmatmul.msk.f32.gmra.mxu2 %vm123_vm0, %v1464_v59  ;;  %1201 = vmatmul.msk.f32.gmra.mxu3 %vm123_vm0, %v1464_v59 }
 0x11a   :  { %v338_v26 = vpop.f32.mrf.mxu2  ;;  %v367_v27 = vpop.f32.mrf.mxu3 }
 0x11f   :  { %1198 = vmatmul.msk.f32.gmra.mxu2 %vm123_vm0, %v1473_v62  ;;  %1202 = vmatmul.msk.f32.gmra.mxu3 %vm123_vm0, %v1473_v62 }
 0x122   :  { %v341_v28 = vpop.f32.mrf.mxu2  ;;  %v370_v29 = vpop.f32.mrf.mxu3 }
 0x123   :  { %v798_v30 = vsub.f32 %v364_v25, %v341_v28  ;;  %v782_v31 = vadd.f32 %v370_v29, %v335_v24 }
 0x125   :  { %v830_v32 = vmul.f32 %v798_v30, %v798_v30  ;;  %v814_v33 = vmul.f32 %v782_v31, %v782_v31 }
 0x127   :  { %v1580_v34 = vadd.f32 %v830_v32, %v814_v33  ;;  %1199 = vmatmul.msk.f32.gmra.mxu2 %vm123_vm0, %v1482_v1  ;;  %1203 = vmatmul.msk.f32.gmra.mxu3 %vm123_vm0, %v1482_v1 }
 0x129   :  { %1223 = vrsqrt.f32 %v1580_v34  ;;  %vm869_vm1 = vcmp.eq.f32.partialorder %v1580_v34, inf  ;;  %v872_v24 = vand.u32 2147483648, %v1580_v34  ;;  %vm871_vm3 = vcmp.eq.f32.partialorder %v1580_v34, 0.0 }
 0x12a   :  { %v344_v35 = vpop.f32.mrf.mxu2  ;;  %v373_v36 = vpop.f32.mrf.mxu3 }
 0x12b   :  { %v799_v37 = vsub.f32 %v367_v27, %v344_v35  ;;  %v783_v38 = vadd.f32 %v373_v36, %v338_v26 }
 0x12d   :  { %v831_v39 = vmul.f32 %v799_v37, %v799_v37  ;;  %v815_v40 = vmul.f32 %v783_v38, %v783_v38 }
 0x12f   :  { %v1586_v41 = vadd.f32 %v831_v39, %v815_v40  ;;  %1212 = vmatmul.msk.f32.vlgmr.msrb.gmra.mxu2 %vm123_vm0, %v1455_v56  ;;  %1216 = vmatmul.msk.f32.vlgmr.msrb.gmra.mxu3 %vm123_vm0, %v1455_v56  ;;  %v1224_v46 = vpop.eup %1223 }
 0x130   :  { %v863_v47 = vmul.f32 %v1224_v46, %v1580_v34 }
 0x131   :  { %1225 = vrsqrt.f32 %v1586_v41  ;;  %vm881_vm5 = vcmp.eq.f32.partialorder %v1586_v41, inf  ;;  %v884_v38 = vand.u32 2147483648, %v1586_v41  ;;  %vm883_vm7 = vcmp.eq.f32.partialorder %v1586_v41, 0.0 }
 0x132   :  { %v393_v42 = vpop.f32.mrf.mxu2  ;;  %v422_v43 = vpop.f32.mrf.mxu3  ;;  %v864_v54 = vmul.f32 %v1224_v46, %v863_v47 }
 0x134   :  { %v865_v60 = vmul.f32 0.5, %v864_v54 }
 0x136   :  { %v866_v2 = vsub.f32 1.5, %v865_v60 }
 0x137   :  { %1213 = vmatmul.msk.f32.gmra.mxu2 %vm123_vm0, %v1464_v59  ;;  %1217 = vmatmul.msk.f32.gmra.mxu3 %vm123_vm0, %v1464_v59  ;;  %v1226_v55 = vpop.eup %1225 }
 0x138   :  { %v875_v57 = vmul.f32 %v1226_v55, %v1586_v41  ;;  %v867_v9 = vmul.f32 %v1224_v46, %v866_v2 }
 0x13a   :  { %v396_v44 = vpop.f32.mrf.mxu2  ;;  %v425_v45 = vpop.f32.mrf.mxu3  ;;  %v876_v3 = vmul.f32 %v1226_v55, %v875_v57  ;;  %v868_v12 = vmul.f32 %v867_v9, %v1580_v34 }
 0x13c   :  { %v870_v20 = vsel %vm869_vm1, %v1580_v34, %v868_v12 }
 0x13d   :  { %v873_v28 = vsel %vm871_vm3, %v872_v24, %v870_v20 }
 0x13f   :  { %1214 = vmatmul.msk.f32.gmra.mxu2 %vm123_vm0, %v1473_v62  ;;  %1218 = vmatmul.msk.f32.gmra.mxu3 %vm123_vm0, %v1473_v62 }
 0x142   :  { %v399_v48 = vpop.f32.mrf.mxu2  ;;  %v428_v49 = vpop.f32.mrf.mxu3 }
 0x143   :  { %v800_v50 = vsub.f32 %v422_v43, %v399_v48  ;;  %v784_v51 = vadd.f32 %v428_v49, %v393_v42 }
 0x145   :  { %v832_v52 = vmul.f32 %v800_v50, %v800_v50  ;;  %v816_v53 = vmul.f32 %v784_v51, %v784_v51 }
 0x147   :  { %v848_v56 = vadd.f32 %v832_v52, %v816_v53  ;;  %1215 = vmatmul.msk.f32.gmra.mxu2 %vm123_vm0, %v1482_v1  ;;  %1219 = vmatmul.msk.f32.gmra.mxu3 %vm123_vm0, %v1482_v1  ;;  %v877_v1 = vmul.f32 0.5, %v876_v3 }
 0x149   :  { %1227 = vrsqrt.f32 %v848_v56  ;;  %v878_v13 = vsub.f32 1.5, %v877_v1  ;;  %vm893_vm2 = vcmp.eq.f32.partialorder %v848_v56, inf  ;;  %v896_v25 = vand.u32 2147483648, %v848_v56 }
 0x14a   :  { %v402_v58 = vpop.f32.mrf.mxu2  ;;  %v431_v59 = vpop.f32.mrf.mxu3  ;;  %vm895_vm4 = vcmp.eq.f32.partialorder %v848_v56, 0.0 }
 0x14b   :  { %v801_v61 = vsub.f32 %v425_v45, %v402_v58  ;;  %v785_v62 = vadd.f32 %v431_v59, %v396_v44  ;;  %v879_v21 = vmul.f32 %v1226_v55, %v878_v13 }
 0x14d   :  { %v833_v63 = vmul.f32 %v801_v61, %v801_v61  ;;  %v817_v0 = vmul.f32 %v785_v62, %v785_v62  ;;  %v880_v30 = vmul.f32 %v879_v21, %v1586_v41  ;;  %v1618_v50 = vpop.f32.mrf.mxu0  ;;  %v1620_v51 = vpop.f32.mrf.mxu1 }
 0x14f   :  { %v1228_v4 = vpop.eup %1227  ;;  %v849_v5 = vadd.f32 %v833_v63, %v817_v0  ;;  %v882_v37 = vsel %vm881_vm5, %v1586_v41, %v880_v30 }
 0x150   :  { %v887_v6 = vmul.f32 %v1228_v4, %v848_v56  ;;  %v885_v46 = vsel %vm883_vm7, %v884_v38, %v882_v37 }
 0x151   :  { %1229 = vrsqrt.f32 %v849_v5  ;;  %vm905_vm6 = vcmp.eq.f32.partialorder %v849_v5, inf  ;;  %v908_v42 = vand.u32 2147483648, %v849_v5  ;;  %vm907_vm8 = vcmp.eq.f32.partialorder %v849_v5, 0.0 }
 0x152   :  { %v451_v7 = vpop.f32.mrf.mxu2  ;;  %v480_v8 = vpop.f32.mrf.mxu3  ;;  %v888_v10 = vmul.f32 %v1228_v4, %v887_v6 }
 0x154   :  { %v889_v11 = vmul.f32 0.5, %v888_v10 }
 0x155   :  { %v1622_v63 = vpop.f32.mrf.mxu0  ;;  %v1624_v0 = vpop.f32.mrf.mxu1 }
 0x156   :  { %v890_v14 = vsub.f32 1.5, %v889_v11 }
 0x157   :  { %v1230_v15 = vpop.eup %1229 }
 0x158   :  { %v899_v16 = vmul.f32 %v1230_v15, %v849_v5  ;;  %v891_v17 = vmul.f32 %v1228_v4, %v890_v14 }
 0x15a   :  { %v454_v18 = vpop.f32.mrf.mxu2  ;;  %v483_v19 = vpop.f32.mrf.mxu3  ;;  %v892_v22 = vmul.f32 %v891_v17, %v848_v56  ;;  %v900_v23 = vmul.f32 %v1230_v15, %v899_v16 }
 0x15c   :  { %v894_v26 = vsel %vm893_vm2, %v848_v56, %v892_v22  ;;  %v901_v27 = vmul.f32 0.5, %v900_v23 }
 0x15d   :  { %v897_v29 = vsel %vm895_vm4, %v896_v25, %v894_v26  ;;  %v1626_v13 = vpop.f32.mrf.mxu0  ;;  %v1628_v14 = vpop.f32.mrf.mxu1 }
 0x15e   :  { %v902_v31 = vsub.f32 1.5, %v901_v27  ;;  %v1056_v32 = vadd.f32 %v897_v29, %v873_v28 }
 0x160   :  { %v903_v33 = vmul.f32 %v1230_v15, %v902_v31 }
 0x162   :  { %v457_v35 = vpop.f32.mrf.mxu2  ;;  %v486_v36 = vpop.f32.mrf.mxu3  ;;  %v904_v39 = vmul.f32 %v903_v33, %v849_v5 }
 0x163   :  { %v802_v34 = vsub.f32 %v480_v8, %v457_v35  ;;  %v786_v40 = vadd.f32 %v486_v36, %v451_v7 }
 0x164   :  { %v906_v43 = vsel %vm905_vm6, %v849_v5, %v904_v39 }
 0x165   :  { %v834_v44 = vmul.f32 %v802_v34, %v802_v34  ;;  %v818_v45 = vmul.f32 %v786_v40, %v786_v40  ;;  %v909_v47 = vsel %vm907_vm8, %v908_v42, %v906_v43  ;;  %v576_v31 = vpop.f32.mrf.mxu0  ;;  %v605_v33 = vpop.f32.mrf.mxu1 }
 0x166   :  { %v1063_v48 = vadd.f32 %v909_v47, %v885_v46 }
 0x167   :  { %v850_v49 = vadd.f32 %v834_v44, %v818_v45 }
 0x169   :  { %1231 = vrsqrt.f32 %v850_v49  ;;  %vm917_vm9 = vcmp.eq.f32.partialorder %v850_v49, inf  ;;  %v920_v10 = vand.u32 2147483648, %v850_v49  ;;  %vm919_vm10 = vcmp.eq.f32.partialorder %v850_v49, 0.0 }
 0x16a   :  { %v460_v52 = vpop.f32.mrf.mxu2  ;;  %v489_v53 = vpop.f32.mrf.mxu3 }
 0x16b   :  { %v803_v54 = vsub.f32 %v483_v19, %v460_v52  ;;  %v787_v55 = vadd.f32 %v489_v53, %v454_v18 }
 0x16d   :  { %v835_v56 = vmul.f32 %v803_v54, %v803_v54  ;;  %v819_v57 = vmul.f32 %v787_v55, %v787_v55  ;;  %v683_v43 = vpop.f32.mrf.mxu0  ;;  %v712_v44 = vpop.f32.mrf.mxu1 }
 0x16f   :  { %v1232_v41 = vpop.eup %1231  ;;  %v851_v58 = vadd.f32 %v835_v56, %v819_v57 }
 0x170   :  { %v911_v59 = vmul.f32 %v1232_v41, %v850_v49 }
 0x171   :  { %1233 = vrsqrt.f32 %v851_v58  ;;  %vm929_vm11 = vcmp.eq.f32.partialorder %v851_v58, inf  ;;  %v932_v24 = vand.u32 2147483648, %v851_v58  ;;  %vm931_vm12 = vcmp.eq.f32.partialorder %v851_v58, 0.0 }
 0x172   :  { %v509_v60 = vpop.f32.mrf.mxu2  ;;  %v538_v61 = vpop.f32.mrf.mxu3  ;;  %v912_v62 = vmul.f32 %v1232_v41, %v911_v59 }
 0x174   :  { %v913_v2 = vmul.f32 0.5, %v912_v62 }
 0x175   :  { %v686_v59 = vpop.f32.mrf.mxu0 }
 0x176   :  { %v914_v3 = vsub.f32 1.5, %v913_v2 }
 0x177   :  { %v1234_v4 = vpop.eup %1233 }
 0x178   :  { %v923_v5 = vmul.f32 %v1234_v4, %v851_v58  ;;  %v915_v6 = vmul.f32 %v1232_v41, %v914_v3 }
 0x17a   :  { %v512_v7 = vpop.f32.mrf.mxu2  ;;  %v541_v8 = vpop.f32.mrf.mxu3  ;;  %v916_v9 = vmul.f32 %v915_v6, %v850_v49  ;;  %v924_v1 = vmul.f32 %v1234_v4, %v923_v5 }
 0x17c   :  { %v918_v11 = vsel %vm917_vm9, %v850_v49, %v916_v9  ;;  %v925_v12 = vmul.f32 0.5, %v924_v1 }
 0x17d   :  { %v921_v15 = vsel %vm919_vm10, %v920_v10, %v918_v11  ;;  %v689_v11 = vpop.f32.mrf.mxu0 }
 0x17e   :  { %v926_v16 = vsub.f32 1.5, %v925_v12  ;;  %v1057_v17 = vadd.f32 %v1056_v32, %v921_v15 }
 0x180   :  { %v927_v18 = vmul.f32 %v1234_v4, %v926_v16  ;;  %v806_v16 = vsub.f32 %v1620_v51, %v1626_v13 }
 0x182   :  { %v515_v19 = vpop.f32.mrf.mxu2  ;;  %v544_v20 = vpop.f32.mrf.mxu3  ;;  %v928_v21 = vmul.f32 %v927_v18, %v851_v58  ;;  %v807_v18 = vsub.f32 %v1624_v0, %v576_v31 }
 0x183   :  { %v804_v22 = vsub.f32 %v538_v61, %v515_v19  ;;  %v788_v23 = vadd.f32 %v544_v20, %v509_v60  ;;  %v715_v60 = vpop.f32.mrf.mxu1  ;;  %v791_v19 = vadd.f32 %v605_v33, %v1622_v63 }
 0x184   :  { %v930_v25 = vsel %vm929_vm11, %v851_v58, %v928_v21 }
 0x185   :  { %v836_v26 = vmul.f32 %v804_v22, %v804_v22  ;;  %v820_v27 = vmul.f32 %v788_v23, %v788_v23  ;;  %v933_v28 = vsel %vm931_vm12, %v932_v24, %v930_v25  ;;  %v838_v24 = vmul.f32 %v806_v16, %v806_v16 }
 0x186   :  { %v1064_v29 = vadd.f32 %v1063_v48, %v933_v28 }
 0x187   :  { %v852_v30 = vadd.f32 %v836_v26, %v820_v27  ;;  %v839_v26 = vmul.f32 %v807_v18, %v807_v18  ;;  %v823_v27 = vmul.f32 %v791_v19, %v791_v19 }
 0x189   :  { %1235 = vrsqrt.f32 %v852_v30  ;;  %vm941_vm13 = vcmp.eq.f32.partialorder %v852_v30, inf  ;;  %v944_v58 = vand.u32 2147483648, %v852_v30  ;;  %vm943_vm14 = vcmp.eq.f32.partialorder %v852_v30, 0.0 }
 0x18a   :  { %v518_v35 = vpop.f32.mrf.mxu2  ;;  %v547_v32 = vpop.f32.mrf.mxu3 }
 0x18b   :  { %v805_v36 = vsub.f32 %v541_v8, %v518_v35  ;;  %v789_v37 = vadd.f32 %v547_v32, %v512_v7  ;;  %v718_v12 = vpop.f32.mrf.mxu1 }
 0x18c   :  { %v794_v35 = vadd.f32 %v718_v12, %v683_v43 }
 0x18d   :  { %v837_v38 = vmul.f32 %v805_v36, %v805_v36  ;;  %v821_v39 = vmul.f32 %v789_v37, %v789_v37 }
 0x18e   :  { %v826_v36 = vmul.f32 %v794_v35, %v794_v35 }
 0x18f   :  { %v1236_v34 = vpop.eup %1235  ;;  %v853_v40 = vadd.f32 %v837_v38, %v821_v39 }
 0x190   :  { %v935_v42 = vmul.f32 %v1236_v34, %v852_v30 }
 0x191   :  { %1237 = vrsqrt.f32 %v853_v40  ;;  %vm953_vm15 = vcmp.eq.f32.partialorder %v853_v40, inf  ;;  %v956_v9 = vand.u32 2147483648, %v853_v40  ;;  %vm955_vm0 = vcmp.eq.f32.partialorder %v853_v40, 0.0 }
 0x192   :  { %v625_v45 = vpop.f32.mrf.mxu2  ;;  %v654_v46 = vpop.f32.mrf.mxu3  ;;  %v936_v47 = vmul.f32 %v1236_v34, %v935_v42 }
 0x193   :  { %v721_v0 = vpop.f32.mrf.mxu1 }
 0x194   :  { %v937_v48 = vmul.f32 0.5, %v936_v47 }
 0x196   :  { %v938_v49 = vsub.f32 1.5, %v937_v48 }
 0x197   :  { %v1238_v52 = vpop.eup %1237 }
 0x198   :  { %v939_v53 = vmul.f32 %v1236_v34, %v938_v49  ;;  %v947_v54 = vmul.f32 %v1238_v52, %v853_v40 }
 0x19a   :  { %v628_v55 = vpop.f32.mrf.mxu2  ;;  %v657_v56 = vpop.f32.mrf.mxu3  ;;  %v940_v57 = vmul.f32 %v939_v53, %v852_v30  ;;  %v948_v41 = vmul.f32 %v1238_v52, %v947_v54 }
 0x19c   :  { %v942_v61 = vsel %vm941_vm13, %v852_v30, %v940_v57  ;;  %v949_v62 = vmul.f32 0.5, %v948_v41  ;;  %v810_v30 = vsub.f32 %v712_v44, %v689_v11 }
 0x19d   :  { %v945_v2 = vsel %vm943_vm14, %v944_v58, %v942_v61 }
 0x19e   :  { %v950_v3 = vsub.f32 1.5, %v949_v62  ;;  %v1630_v4 = vadd.f32 %v1057_v17, %v945_v2  ;;  %v790_v17 = vadd.f32 %v1628_v14, %v1618_v50  ;;  %v692_v50 = vpop.f32.mrf.mxu0  ;;  %v1642_v14 = vadd.f32 %v839_v26, %v823_v27 }
 0x19f   :  { %v842_v33 = vmul.f32 %v810_v30, %v810_v30  ;;  %v811_v34 = vsub.f32 %v715_v60, %v692_v50 }
 0x1a0   :  { %v951_v5 = vmul.f32 %v1238_v52, %v950_v3  ;;  %v822_v25 = vmul.f32 %v790_v17, %v790_v17  ;;  %vm977_vm2 = vcmp.eq.f32.partialorder %v1642_v14, inf  ;;  %vm979_vm4 = vcmp.eq.f32.partialorder %v1642_v14, 0.0 }
 0x1a1   :  { %v1650_v43 = vadd.f32 %v842_v33, %v826_v36  ;;  %v843_v44 = vmul.f32 %v811_v34, %v811_v34 }
 0x1a2   :  { %v631_v6 = vpop.f32.mrf.mxu2  ;;  %v660_v7 = vpop.f32.mrf.mxu3  ;;  %v952_v8 = vmul.f32 %v951_v5, %v853_v40  ;;  %v1640_v32 = vadd.f32 %v838_v24, %v822_v25 }
 0x1a3   :  { %v808_v22 = vsub.f32 %v654_v46, %v631_v6  ;;  %v792_v23 = vadd.f32 %v660_v7, %v625_v45  ;;  %vm1013_vm6 = vcmp.eq.f32.partialorder %v1650_v43, inf  ;;  %vm1015_vm10 = vcmp.eq.f32.partialorder %v1650_v43, 0.0 }
 0x1a4   :  { %v954_v1 = vsel %vm953_vm15, %v853_v40, %v952_v8  ;;  %v795_v40 = vadd.f32 %v721_v0, %v686_v59  ;;  %1239 = vrsqrt.f32 %v1640_v32  ;;  %vm965_vm1 = vcmp.eq.f32.partialorder %v1640_v32, inf }
 0x1a5   :  { %v957_v10 = vsel %vm955_vm0, %v956_v9, %v954_v1  ;;  %v840_v51 = vmul.f32 %v808_v22, %v808_v22  ;;  %v824_v13 = vmul.f32 %v792_v23, %v792_v23  ;;  %1241 = vrsqrt.f32 %v1642_v14 }
 0x1a6   :  { %v1632_v15 = vadd.f32 %v1064_v29, %v957_v10  ;;  %v827_v45 = vmul.f32 %v795_v40, %v795_v40  ;;  %vm967_vm3 = vcmp.eq.f32.partialorder %v1640_v32, 0.0 }
 0x1a7   :  { %v1644_v39 = vadd.f32 %v840_v51, %v824_v13 }
 0x1a8   :  { %v1655_v52 = vadd.f32 %v843_v44, %v827_v45 }
 0x1a9   :  { %1243 = vrsqrt.f32 %v1644_v39  ;;  %vm989_vm5 = vcmp.eq.f32.partialorder %v1644_v39, inf  ;;  %vm991_vm8 = vcmp.eq.f32.partialorder %v1644_v39, 0.0 }
 0x1aa   :  { %v634_v20 = vpop.f32.mrf.mxu2  ;;  %v663_v21 = vpop.f32.mrf.mxu3  ;;  %vm1025_vm11 = vcmp.eq.f32.partialorder %v1655_v52, inf  ;;  %vm1027_vm13 = vcmp.eq.f32.partialorder %v1655_v52, 0.0 }
 0x1ab   :  { %v809_v28 = vsub.f32 %v657_v56, %v634_v20  ;;  %v793_v29 = vadd.f32 %v663_v21, %v628_v55  ;;  %v1240_v46 = vpop.eup %1239 }
 0x1ac   :  { %v1242_v49 = vpop.eup %1241  ;;  %v959_v54 = vmul.f32 %v1240_v46, %v1640_v32 }
 0x1ad   :  { %v841_v63 = vmul.f32 %v809_v28, %v809_v28  ;;  %v825_v31 = vmul.f32 %v793_v29, %v793_v29  ;;  %v971_v55 = vmul.f32 %v1242_v49, %v1642_v14 }
 0x1ae   :  { %v960_v58 = vmul.f32 %v1240_v46, %v959_v54 }
 0x1af   :  { %v1648_v42 = vadd.f32 %v841_v63, %v825_v31  ;;  %v1244_v53 = vpop.eup %1243  ;;  %v972_v61 = vmul.f32 %v1242_v49, %v971_v55 }
 0x1b0   :  { %v983_v41 = vmul.f32 %v1244_v53, %v1644_v39  ;;  %v961_v1 = vmul.f32 0.5, %v960_v58 }
 0x1b1   :  { %1245 = vrsqrt.f32 %v1648_v42  ;;  %v973_v10 = vmul.f32 0.5, %v972_v61  ;;  %vm1001_vm7 = vcmp.eq.f32.partialorder %v1648_v42, inf  ;;  %vm1003_vm9 = vcmp.eq.f32.partialorder %v1648_v42, 0.0 }
 0x1b2   :  { %v741_v37 = vpop.f32.mrf.mxu2  ;;  %v770_v38 = vpop.f32.mrf.mxu3  ;;  %1247 = vrsqrt.f32 %v1650_v43  ;;  %v984_v6 = vmul.f32 %v1244_v53, %v983_v41  ;;  %v962_v19 = vsub.f32 1.5, %v961_v1 }
 0x1b3   :  { %1249 = vrsqrt.f32 %v1655_v52  ;;  %v974_v22 = vsub.f32 1.5, %v973_v10 }
 0x1b4   :  { %v985_v17 = vmul.f32 0.5, %v984_v6  ;;  %v963_v35 = vmul.f32 %v1240_v46, %v962_v19 }
 0x1b5   :  { %v975_v51 = vmul.f32 %v1242_v49, %v974_v22  ;;  %v968_v49 = vand.u32 2147483648, %v1640_v32 }
 0x1b6   :  { %v986_v27 = vsub.f32 1.5, %v985_v17 }
 0x1b7   :  { %v1246_v56 = vpop.eup %1245 }
 0x1b8   :  { %v1248_v57 = vpop.eup %1247  ;;  %v995_v62 = vmul.f32 %v1246_v56, %v1648_v42  ;;  %v987_v31 = vmul.f32 %v1244_v53, %v986_v27  ;;  %v980_v53 = vand.u32 2147483648, %v1642_v14 }
 0x1b9   :  { %v1007_v5 = vmul.f32 %v1248_v57, %v1650_v43  ;;  %v1250_v7 = vpop.eup %1249 }
 0x1ba   :  { %v744_v47 = vpop.f32.mrf.mxu2  ;;  %v773_v48 = vpop.f32.mrf.mxu3  ;;  %v996_v11 = vmul.f32 %v1246_v56, %v995_v62  ;;  %v1019_v18 = vmul.f32 %v1250_v7, %v1655_v52  ;;  %v988_v45 = vmul.f32 %v987_v31, %v1644_v39 }
 0x1bb   :  { %v1008_v16 = vmul.f32 %v1248_v57, %v1007_v5 }
 0x1bc   :  { %v997_v23 = vmul.f32 0.5, %v996_v11  ;;  %v1020_v28 = vmul.f32 %v1250_v7, %v1019_v18  ;;  %v990_v58 = vsel %vm989_vm5, %v1644_v39, %v988_v45 }
 0x1bd   :  { %v1009_v26 = vmul.f32 0.5, %v1008_v16 }
 0x1be   :  { %v998_v13 = vsub.f32 1.5, %v997_v23  ;;  %v1021_v33 = vmul.f32 0.5, %v1020_v28 }
 0x1bf   :  { %v1010_v63 = vsub.f32 1.5, %v1009_v26 }
 0x1c0   :  { %v999_v34 = vmul.f32 %v1246_v56, %v998_v13  ;;  %v1022_v46 = vsub.f32 1.5, %v1021_v33 }
 0x1c1   :  { %v1011_v44 = vmul.f32 %v1248_v57, %v1010_v63 }
 0x1c2   :  { %v747_v59 = vpop.f32.mrf.mxu2  ;;  %v776_v60 = vpop.f32.mrf.mxu3  ;;  %v1000_v55 = vmul.f32 %v999_v34, %v1648_v42 }
 0x1c3   :  { %v812_v2 = vsub.f32 %v770_v38, %v747_v59  ;;  %v796_v3 = vadd.f32 %v776_v60, %v741_v37  ;;  %v964_v37 = vmul.f32 %v963_v35, %v1640_v32  ;;  %v976_v38 = vmul.f32 %v975_v51, %v1642_v14 }
 0x1c4   :  { %v1012_v41 = vmul.f32 %v1011_v44, %v1650_v43  ;;  %v1023_v59 = vmul.f32 %v1250_v7, %v1022_v46 }
 0x1c5   :  { %v844_v8 = vmul.f32 %v812_v2, %v812_v2  ;;  %v828_v9 = vmul.f32 %v796_v3, %v796_v3  ;;  %v978_v54 = vsel %vm977_vm2, %v1642_v14, %v976_v38  ;;  %v992_v14 = vand.u32 2147483648, %v1644_v39 }
 0x1c6   :  { %v981_v62 = vsel %vm979_vm4, %v980_v53, %v978_v54  ;;  %v1002_v2 = vsel %vm1001_vm7, %v1648_v42, %v1000_v55  ;;  %v1014_v7 = vsel %vm1013_vm6, %v1650_v43, %v1012_v41  ;;  %v1024_v1 = vmul.f32 %v1023_v59, %v1655_v52 }
 0x1c7   :  { %v1663_v12 = vadd.f32 %v844_v8, %v828_v9  ;;  %v993_v6 = vsel %vm991_vm8, %v992_v14, %v990_v58  ;;  %v1004_v8 = vand.u32 2147483648, %v1648_v42  ;;  %v1016_v9 = vand.u32 2147483648, %v1650_v43 }
 0x1c8   :  { %v1066_v19 = vadd.f32 %v1632_v15, %v981_v62  ;;  %v1028_v42 = vand.u32 2147483648, %v1655_v52 }
 0x1c9   :  { %1251 = vrsqrt.f32 %v1663_v12  ;;  %v1005_v39 = vsel %vm1003_vm9, %v1004_v8, %v1002_v2  ;;  %vm1037_vm12 = vcmp.eq.f32.partialorder %v1663_v12, inf  ;;  %vm1039_vm14 = vcmp.eq.f32.partialorder %v1663_v12, 0.0 }
 0x1ca   :  { %v750_v20 = vpop.f32.mrf.mxu2  ;;  %v779_v21 = vpop.f32.mrf.mxu3  ;;  %v1017_v22 = vsel %vm1015_vm10, %v1016_v9, %v1014_v7 }
 0x1cb   :  { %v813_v24 = vsub.f32 %v773_v48, %v750_v20  ;;  %v797_v25 = vadd.f32 %v779_v21, %v744_v47  ;;  %v966_v48 = vsel %vm965_vm1, %v1640_v32, %v964_v37  ;;  %v1040_v20 = vand.u32 2147483648, %v1663_v12 }
 0x1cc   :  { %v969_v61 = vsel %vm967_vm3, %v968_v49, %v966_v48  ;;  %v1067_v21 = vadd.f32 %v1066_v19, %v1005_v39  ;;  %vm1094_vm1 = vcmask 0  }
 0x1cd   :  { %v845_v29 = vmul.f32 %v813_v24, %v813_v24  ;;  %v829_v30 = vmul.f32 %v797_v25, %v797_v25  ;;  %v1059_v11 = vadd.f32 %v1630_v4, %v969_v61  ;;  %v1026_v4 = vsel %vm1025_vm11, %v1655_v52, %v1024_v1 }
 0x1ce   :  { %v1029_v26 = vsel %vm1027_vm13, %v1028_v42, %v1026_v4 }
 0x1cf   :  { %v1252_v50 = vpop.eup %1251  ;;  %v1667_v0 = vadd.f32 %v845_v29, %v829_v30  ;;  %v1060_v18 = vadd.f32 %v1059_v11, %v993_v6  ;;  %v1068_v52 = vadd.f32 %v1067_v21, %v1029_v26  ;;  %v1080_v30 = vld [vmem:[%s1727_s4 + $0x8] sm:$0xff] }
 0x1d0   :  { %v1031_v36 = vmul.f32 %v1252_v50, %v1663_v12 }
 0x1d1   :  { %1253 = vrsqrt.f32 %v1667_v0  ;;  %v1061_v25 = vadd.f32 %v1060_v18, %v1017_v22  ;;  %vm1049_vm15 = vcmp.eq.f32.partialorder %v1667_v0, inf  ;;  %v1052_v15 = vand.u32 2147483648, %v1667_v0 }
 0x1d2   :  { %v1032_v40 = vmul.f32 %v1252_v50, %v1031_v36  ;;  %vm1051_vm0 = vcmp.eq.f32.partialorder %v1667_v0, 0.0 }
 0x1d4   :  { %v1033_v47 = vmul.f32 0.5, %v1032_v40 }
 0x1d6   :  { %v1034_v56 = vsub.f32 1.5, %v1033_v47 }
 0x1d7   :  { %v1254_v57 = vpop.eup %1253 }
 0x1d8   :  { %v1035_v32 = vmul.f32 %v1252_v50, %v1034_v56  ;;  %v1043_v60 = vmul.f32 %v1254_v57, %v1667_v0 }
 0x1da   :  { %v1036_v3 = vmul.f32 %v1035_v32, %v1663_v12  ;;  %v1044_v5 = vmul.f32 %v1254_v57, %v1043_v60 }
 0x1dc   :  { %v1045_v10 = vmul.f32 0.5, %v1044_v5  ;;  %v1038_v16 = vsel %vm1037_vm12, %v1663_v12, %v1036_v3  ;;  %v1079_v12 = vld [vmem:[%s1727_s4] sm:$0xff] }
 0x1dd   :  { %v1041_v23 = vsel %vm1039_vm14, %v1040_v20, %v1038_v16 }
 0x1de   :  { %v1046_v17 = vsub.f32 1.5, %v1045_v10  ;;  %v1062_v28 = vadd.f32 %v1061_v25, %v1041_v23 }
 0x1e0   :  { %v1047_v43 = vmul.f32 %v1254_v57, %v1046_v17  ;;  %v1081_v51 = vmul.f32 %v1079_v12, %v1062_v28 }
 0x1e2   :  { %v1048_v24 = vmul.f32 %v1047_v43, %v1667_v0 }
 0x1e4   :  { %v1050_v27 = vsel %vm1049_vm15, %v1667_v0, %v1048_v24 }
 0x1e5   :  { %v1053_v29 = vsel %vm1051_vm0, %v1052_v15, %v1050_v27 }
 0x1e6   :  { %v1069_v35 = vadd.f32 %v1068_v52, %v1053_v29 }
 0x1e8   :  { %v1082_v13 = vmul.f32 %v1080_v30, %v1069_v35 }
 0x1ea   :  { %v1083_v50 = vadd.f32 %v1082_v13, %v1081_v51 }
 0x1ec   :  { %1084 = vadd.xlane.f32.xlu0 %v1083_v50 }
 0x25f   :  { %v1085_v63 = vpop.xlane.xlu0 %1084 }
 0x260   :  { %v1086_v31 = vrot.slane %v1085_v63, 4 }
 0x262   :  { %v1087_v33 = vadd.f32 %v1086_v31, %v1085_v63 }
 0x264   :  { %v1088_v0 = vrot.slane %v1087_v33, 2 }
 0x266   :  { %v1089_v36 = vadd.f32 %v1088_v0, %v1087_v33 }
 0x268   :  { %v1090_v37 = vrot.slane %v1089_v36, 1 }
 0x26a   :  { %v1091_v38 = vadd.f32 %v1090_v37, %v1089_v36 }
 0x26c   :  { %1220 = vpush %v1091_v38 }
 0x29d   :  { %s1221_s4 = spop %1220 }
 0x29e   :  { %v1093_v34 = vstv %s1221_s4 }
 0x29f   :  { %1095 = vst.msk [vmem:[#allocation3] sm:$0x1] %vm1094_vm1, %v1093_v34 }
 0x2a0   :  { %1106 = dma.vmem_to_hbm [thread:$0]  %s1102_s22, 16, %s1104_s25, [#allocation4]  }
 0x2a1   :  { %1279 = dma.done.wait [#allocation4], 16  }
 0x2a2   :  { %1280 = vsyncadd [#allocation4], 4294967280 }
 0x2a3   :  { %1111 = vsyncpa [#allocation4], 1 }

</bundles_post_ra>
